<compile_context>
chip_gen: v7x
topology: tpu7x:2x2x1
jax: 0.10.0
libtpu: 0.0.40
codegen_flags: <defaults>
</compile_context>

<pallas_src>
import functools

import jax
import jax.numpy as jnp
from jax.experimental import pallas as pl
from jax.experimental.pallas import tpu as pltpu


def _round_up(x, m):
    return ((x + m - 1) // m) * m


# ---------------------------------------------------------------------------
# Path 1: fully fused forward (A VMEM-resident), single gridless kernel.
# ---------------------------------------------------------------------------
def _tagconv_fused_kernel(x_ref, w_ref, a_ref, b_ref, o_ref, *, K, F_out):
    # y = x @ W'  -> [N, (K+1)*F_out] held in f32
    y = jnp.dot(x_ref[...], w_ref[...], preferred_element_type=jnp.float32)
    a = a_ref[...]
    h = y[:, K * F_out:(K + 1) * F_out]
    for k in range(K - 1, -1, -1):          # Horner: h = y_k + A @ h
        h = y[:, k * F_out:(k + 1) * F_out] + jnp.dot(
            a, h.astype(a.dtype), preferred_element_type=jnp.float32)
    o_ref[...] = (h + b_ref[...]).astype(o_ref.dtype)


def _tagconv_fused(a_c, x_c, w_c, b_c, K, F_out, out_dtype):
    N, F_in = x_c.shape
    C = w_c.shape[1]
    cost = pl.CostEstimate(
        flops=2 * N * F_in * C + K * 2 * N * N * F_out,
        transcendentals=0,
        bytes_accessed=(N * N + N * F_in + F_in * C) * 2 + N * F_out * 4,
    )
    kernel = functools.partial(_tagconv_fused_kernel, K=K, F_out=F_out)
    vmem_spec = pl.BlockSpec(memory_space=pltpu.MemorySpace.VMEM)
    return pl.pallas_call(
        kernel,
        out_shape=jax.ShapeDtypeStruct((N, F_out), out_dtype),
        in_specs=[vmem_spec, vmem_spec, vmem_spec, vmem_spec],
        out_specs=vmem_spec,
        compiler_params=pltpu.CompilerParams(
            vmem_limit_bytes=48 * 1024 * 1024),
        cost_estimate=cost,
    )(x_c, w_c, a_c, b_c)


# ---------------------------------------------------------------------------
# Path 2 kernels: tiled/streaming for graphs whose A does not fit VMEM.
# ---------------------------------------------------------------------------
def _fused_linear_kernel(x_ref, w_ref, o_ref):
    # lane-dense (TM, (K+1)*F_out) output block, W' fully resident
    o_ref[...] = jnp.dot(x_ref[...], w_ref[...],
                         preferred_element_type=jnp.float32).astype(o_ref.dtype)


def _prop_step_kernel(yk_ref, a_ref, h_ref, b_ref, o_ref, acc_ref, *,
                      tk, add_bias):
    r = pl.program_id(1)

    @pl.when(r == 0)
    def _():
        acc_ref[...] = yk_ref[...].astype(jnp.float32)

    # h is fully VMEM-resident; slice the reduction block in-kernel.
    start = pl.multiple_of(r * tk, tk)
    h_blk = h_ref[pl.ds(start, tk), :].astype(a_ref.dtype)
    acc_ref[...] += jnp.dot(a_ref[...], h_blk,
                            preferred_element_type=jnp.float32)

    @pl.when(r == pl.num_programs(1) - 1)
    def _():
        res = acc_ref[...]
        if add_bias:
            res = res + b_ref[...]
        o_ref[...] = res.astype(o_ref.dtype)


def _choose_tiles(n_pad):
    """Large streaming tiles; keep >= 2 row tiles for megacore sharding."""
    tm = 128
    for cand in (512, 256):
        if n_pad % cand == 0 and n_pad // cand >= 2:
            tm = cand
            break
    tk = 256
    for cand in (4096, 2048, 1024, 512, 256):
        # double-buffered bf16 A tile budget of 16 MiB (safe on v7x's 64 MiB)
        if n_pad % cand == 0 and 2 * tm * cand * 2 <= 16 * 1024 * 1024:
            tk = cand
            break
    return tm, tk


def _tagconv_tiled(a_c, x_c, w_c, b_c, K, n_real, f_out_real,
                   n_pad, f_out_pad, out_dtype, compute_dtype):
    F_in = x_c.shape[1]
    C_pad = (K + 1) * f_out_pad
    TM, TK = _choose_tiles(n_pad)

    # ---- step 1: y = x @ W'  (grid over row tiles only, W' resident) ------
    lin_vmem = 2 * (TM * F_in + F_in * C_pad + TM * C_pad) * 2
    y = pl.pallas_call(
        _fused_linear_kernel,
        out_shape=jax.ShapeDtypeStruct((n_pad, C_pad), compute_dtype),
        grid=(n_pad // TM,),
        in_specs=[
            pl.BlockSpec((TM, F_in), lambda i: (i, 0)),
            pl.BlockSpec((F_in, C_pad), lambda i: (0, 0)),   # W' resident
        ],
        out_specs=pl.BlockSpec((TM, C_pad), lambda i: (i, 0)),
        compiler_params=pltpu.CompilerParams(
            dimension_semantics=("parallel",),
            vmem_limit_bytes=min(max(2 * lin_vmem, 32 << 20), 48 << 20)),
        cost_estimate=pl.CostEstimate(
            flops=2 * n_pad * F_in * C_pad, transcendentals=0,
            bytes_accessed=(n_pad * F_in + F_in * C_pad + n_pad * C_pad) * 2),
    )(x_c, w_c)

    if K == 0:
        return (y[:n_real, :f_out_real].astype(jnp.float32)
                + b_c[:, :f_out_real]).astype(out_dtype)

    # ---- step 2: Horner propagation, h f32-resident, A streamed in tiles --
    prop_vmem = (2 * TM * TK * 2                # A tiles (bf16, double buffer)
                 + 2 * TM * f_out_pad * 2       # y_k tiles
                 + 2 * n_pad * f_out_pad * 4    # resident h (f32)
                 + 2 * TM * f_out_pad * 4       # out tiles
                 + TM * f_out_pad * 4           # f32 accumulator
                 + 2 * f_out_pad * 4)           # bias
    prop_limit = min(max(2 * prop_vmem, 32 << 20), 48 << 20)
    prop_cost = pl.CostEstimate(
        flops=2 * n_pad * n_pad * f_out_pad, transcendentals=0,
        bytes_accessed=n_pad * n_pad * 2 + n_pad * f_out_pad * (2 + 4 + 4))

    h = y            # first hop propagates the y_K column block of y
    h_col = K        # block-column index of the h operand inside its array
    for k in range(K - 1, -1, -1):
        final = (k == 0)
        kernel = functools.partial(_prop_step_kernel, tk=TK, add_bias=final)
        h = pl.pallas_call(
            kernel,
            out_shape=jax.ShapeDtypeStruct(
                (n_pad, f_out_pad), out_dtype if final else jnp.float32),
            grid=(n_pad // TM, n_pad // TK),
            in_specs=[
                # hop-k block of y selected purely via index_map (no HBM slice)
                pl.BlockSpec((TM, f_out_pad), lambda i, r, c=k: (i, c)),
                # A tile, streamed along the reduction axis
                pl.BlockSpec((TM, TK), lambda i, r: (i, r)),
                # current h, fully resident (constant block index)
                pl.BlockSpec((n_pad, f_out_pad), lambda i, r, c=h_col: (0, c)),
                # bias (only used on the final hop)
                pl.BlockSpec((1, f_out_pad), lambda i, r: (0, 0)),
            ],
            out_specs=pl.BlockSpec((TM, f_out_pad), lambda i, r: (i, 0)),
            scratch_shapes=[pltpu.VMEM((TM, f_out_pad), jnp.float32)],
            compiler_params=pltpu.CompilerParams(
                dimension_semantics=("parallel", "arbitrary"),
                vmem_limit_bytes=prop_limit),
            cost_estimate=prop_cost,
        )(y, a_c, h, b_c)
        h_col = 0
    return h[:n_real, :f_out_real]


# ---------------------------------------------------------------------------
# Wrapper: TAGConv forward (auto path selection)
# ---------------------------------------------------------------------------
def tagconv_pallas(a_norm, x, weight, bias, K, *,
                   compute_dtype=jnp.bfloat16, out_dtype=jnp.float32,
                   force_path=None):
    """lin(concat([x, Ax, ..., A^K x])) with Pallas TPU kernels.

    a_norm: [N, N]  dense GCN-normalized adjacency (A[i, j]: edge j -> i)
    x:      [N, F_in]
    weight: [(K+1)*F_in, F_out]  fused weight, row blocks ordered per hop
    bias:   [1, F_out]
    """
    N, F_in = x.shape
    F_out = weight.shape[1]
    assert weight.shape[0] == (K + 1) * F_in
    C = (K + 1) * F_out

    # Conservative residency estimate for the fused path: A/x/W' in bf16 plus
    # f32 y/h/out temporaries; 30 MiB budget is safe on v5e/v6e/v7x.
    fused_bytes = ((N * N + N * F_in + F_in * C) * 2
                   + N * C * 4 + 3 * N * F_out * 4)
    use_fused = fused_bytes <= (30 << 20)
    if force_path == "fused":
        use_fused = True
    elif force_path == "tiled":
        use_fused = False

    if use_fused:
        # [(K+1)*F_in, F_out] -> W' [F_in, (K+1)*F_out]; column block k == W_k
        w_fused = (weight.reshape(K + 1, F_in, F_out)
                         .transpose(1, 0, 2).reshape(F_in, C))
        return _tagconv_fused(a_norm.astype(compute_dtype),
                              x.astype(compute_dtype),
                              w_fused.astype(compute_dtype),
                              bias.astype(jnp.float32),
                              K, F_out, out_dtype)

    # Tiled path: pad N and F_out to tile-friendly sizes (no full-extent
    # fallback blocks), slice the padding off at the end.
    n_pad = _round_up(N, 256)
    f_out_pad = _round_up(F_out, 128)
    w3 = weight.reshape(K + 1, F_in, F_out)
    w3 = jnp.pad(w3, ((0, 0), (0, 0), (0, f_out_pad - F_out)))
    w_fused = w3.transpose(1, 0, 2).reshape(F_in, (K + 1) * f_out_pad)
    b_pad = jnp.pad(bias, ((0, 0), (0, f_out_pad - F_out))).astype(jnp.float32)
    x_pad = jnp.pad(x, ((0, n_pad - N), (0, 0)))
    a_pad = jnp.pad(a_norm, ((0, n_pad - N), (0, n_pad - N)))

    return _tagconv_tiled(a_pad.astype(compute_dtype),
                          x_pad.astype(compute_dtype),
                          w_fused.astype(compute_dtype),
                          b_pad, K, N, F_out, n_pad, f_out_pad,
                          out_dtype, compute_dtype)


# ---------------------------------------------------------------------------
# Glue: self-loops + symmetric GCN normalization -> dense adjacency
# (duplicate edges accumulate via .at[].add, matching SpMM semantics)
# ---------------------------------------------------------------------------
def build_gcn_adj(edge_index, edge_weight, num_nodes,
                  add_self_loops=True, normalize=True, dtype=jnp.float32):
    row = edge_index[0]
    col = edge_index[1]
    if edge_weight is None:
        edge_weight = jnp.ones(row.shape, dtype)
    if add_self_loops:
        loop = jnp.arange(num_nodes, dtype=row.dtype)
        row = jnp.concatenate([row, loop])
        col = jnp.concatenate([col, loop])
        edge_weight = jnp.concatenate([edge_weight, jnp.ones(num_nodes, dtype)])
    if normalize:
        deg = jnp.zeros((num_nodes,), dtype).at[col].add(edge_weight)
        dinv = jnp.where(deg > 0, jax.lax.rsqrt(deg), 0.0)
        edge_weight = dinv[row] * edge_weight * dinv[col]
    # spmm convention: out[row] += w * x[col]  =>  A[row, col] = w
    return jnp.zeros((num_nodes, num_nodes), dtype).at[row, col].add(edge_weight)


# ---------------------------------------------------------------------------
# Parameter init (glorot-uniform like PyG's Linear('glorot'))
# ---------------------------------------------------------------------------
def init_tagconv_params(key, in_channels, out_channels, K):
    fan_in = in_channels * (K + 1)
    fan_out = out_channels
    limit = jnp.sqrt(6.0 / (fan_in + fan_out))
    w = jax.random.uniform(key, (fan_in, fan_out), jnp.float32, -limit, limit)
    b = jnp.zeros((1, fan_out), jnp.float32)
    return w, b


# ---------------------------------------------------------------------------
# Pure-JAX f32 reference (direct concat form) for sanity checking
# ---------------------------------------------------------------------------
def tagconv_ref(a_norm, x, weight, bias, K):
    xs = [x]
    h = x
    for _ in range(K):
        h = a_norm @ h
        xs.append(h)
    return jnp.concatenate(xs, axis=-1) @ weight + bias


if __name__ == "__main__":
    key = jax.random.PRNGKey(0)

    # ---------- test 1: small graph -> fully fused single-kernel path ------
    k_x, k_src, k_dst, k_w, k_b = jax.random.split(key, 5)
    N, F_in, F_out, K, E = 256, 128, 128, 2, 1024
    x = jax.random.normal(k_x, (N, F_in), jnp.float32)
    src = jax.random.randint(k_src, (E,), 0, N, dtype=jnp.int32)
    dst = jax.random.randint(k_dst, (E,), 0, N, dtype=jnp.int32)
    edge_index = jnp.stack([dst, src])      # [0] = row (dest), [1] = col (src)
    weight, _ = init_tagconv_params(k_w, F_in, F_out, K)
    bias = 0.1 * jax.random.normal(k_b, (1, F_out), jnp.float32)
    a_norm = build_gcn_adj(edge_index, None, N)

    out = jax.block_until_ready(tagconv_pallas(a_norm, x, weight, bias, K))
    ref = tagconv_ref(a_norm, x, weight, bias, K)
    assert out.shape == (N, F_out)
    # bf16 MXU operands with f32 accumulation -> loosened tolerance vs f32 ref
    assert jnp.allclose(out, ref, atol=5e-2, rtol=5e-2)

    # ---------- test 2: force the tiled/padded streaming path --------------
    k_x2, k_src2, k_dst2, k_w2, k_b2 = jax.random.split(jax.random.PRNGKey(1), 5)
    N2, F_in2, F_out2, K2, E2 = 700, 96, 64, 2, 4096   # exercises N/F_out padding
    x2 = jax.random.normal(k_x2, (N2, F_in2), jnp.float32)
    src2 = jax.random.randint(k_src2, (E2,), 0, N2, dtype=jnp.int32)
    dst2 = jax.random.randint(k_dst2, (E2,), 0, N2, dtype=jnp.int32)
    edge_index2 = jnp.stack([dst2, src2])
    weight2, _ = init_tagconv_params(k_w2, F_in2, F_out2, K2)
    bias2 = 0.1 * jax.random.normal(k_b2, (1, F_out2), jnp.float32)
    a_norm2 = build_gcn_adj(edge_index2, None, N2)

    out2 = jax.block_until_ready(
        tagconv_pallas(a_norm2, x2, weight2, bias2, K2, force_path="tiled"))
    ref2 = tagconv_ref(a_norm2, x2, weight2, bias2, K2)
    assert out2.shape == (N2, F_out2)
    assert jnp.allclose(out2, ref2, atol=5e-2, rtol=5e-2)

    print("KERNEL_OK")
</pallas_src>

<mosaic_0001>
module attributes {stable_mosaic.version = 11 : i64} {
  func.func @_tagconv_fused_kernel(%arg0: memref<256x128xbf16, #tpu.memory_space<vmem>>, %arg1: memref<128x384xbf16, #tpu.memory_space<vmem>>, %arg2: memref<256x256xbf16, #tpu.memory_space<vmem>>, %arg3: memref<1x128xf32, #tpu.memory_space<vmem>>, %arg4: memref<256x128xf32, #tpu.memory_space<vmem>>) attributes {dimension_semantics = [], scalar_prefetch = 0 : i64, scratch_operands = 0 : i64, tpu.core_type = #tpu.core_type<tc>} {
    %c0 = arith.constant 0 : index
    %c0_0 = arith.constant 0 : index
    %0 = vector.load %arg0[%c0, %c0_0] : memref<256x128xbf16, #tpu.memory_space<vmem>>, vector<256x128xbf16>
    %c0_1 = arith.constant 0 : index
    %c0_2 = arith.constant 0 : index
    %1 = vector.load %arg1[%c0_1, %c0_2] : memref<128x384xbf16, #tpu.memory_space<vmem>>, vector<128x384xbf16>
    %cst = arith.constant dense<0.000000e+00> : vector<256x384xf32>
    %2 = tpu.matmul %0, %1, %cst {dimension_numbers = #tpu.dot_dimension_numbers<[1], [0], [0], [1], [0, 0, 1, 1], [], []>} : vector<256x128xbf16>, vector<128x384xbf16>, vector<256x384xf32> -> vector<256x384xf32>
    %c0_3 = arith.constant 0 : index
    %c0_4 = arith.constant 0 : index
    %3 = vector.load %arg2[%c0_3, %c0_4] : memref<256x256xbf16, #tpu.memory_space<vmem>>, vector<256x256xbf16>
    %4 = vector.extract_strided_slice %2 {offsets = [0, 256], sizes = [256, 128], strides = [1, 1]} : vector<256x384xf32> to vector<256x128xf32>
    %5 = vector.extract_strided_slice %2 {offsets = [0, 128], sizes = [256, 128], strides = [1, 1]} : vector<256x384xf32> to vector<256x128xf32>
    %6 = arith.truncf %4 : vector<256x128xf32> to vector<256x128xbf16>
    %cst_5 = arith.constant dense<0.000000e+00> : vector<256x128xf32>
    %7 = tpu.matmul %3, %6, %cst_5 {dimension_numbers = #tpu.dot_dimension_numbers<[1], [0], [0], [1], [0, 0, 1, 1], [], []>} : vector<256x256xbf16>, vector<256x128xbf16>, vector<256x128xf32> -> vector<256x128xf32>
    %8 = arith.addf %5, %7 : vector<256x128xf32>
    %9 = vector.extract_strided_slice %2 {offsets = [0, 0], sizes = [256, 128], strides = [1, 1]} : vector<256x384xf32> to vector<256x128xf32>
    %10 = arith.truncf %8 : vector<256x128xf32> to vector<256x128xbf16>
    %cst_6 = arith.constant dense<0.000000e+00> : vector<256x128xf32>
    %11 = tpu.matmul %3, %10, %cst_6 {dimension_numbers = #tpu.dot_dimension_numbers<[1], [0], [0], [1], [0, 0, 1, 1], [], []>} : vector<256x256xbf16>, vector<256x128xbf16>, vector<256x128xf32> -> vector<256x128xf32>
    %12 = arith.addf %9, %11 : vector<256x128xf32>
    %c0_7 = arith.constant 0 : index
    %c0_8 = arith.constant 0 : index
    %13 = vector.load %arg3[%c0_7, %c0_8] : memref<1x128xf32, #tpu.memory_space<vmem>>, vector<1x128xf32>
    %14 = vector.broadcast %13 : vector<1x128xf32> to vector<256x128xf32>
    %15 = arith.addf %12, %14 : vector<256x128xf32>
    %c0_9 = arith.constant 0 : index
    %c0_10 = arith.constant 0 : index
    %16 = vector.load %arg4[%c0_9, %c0_10] : memref<256x128xf32, #tpu.memory_space<vmem>>, vector<256x128xf32>
    tpu.vector_store %arg4[%c0_9, %c0_10], %15 {strides = array<i32>} : memref<256x128xf32, #tpu.memory_space<vmem>>, vector<256x128xf32>,
    return
  }
}

</mosaic_0001>

<bundles_post_ra>
// kernel: tpu_custom_call.1
= control target key start
LH: loop header
LB: loop body
LE: loop exit
PB: predicated region body
PF: predicated region fallthrough
CT: control target
= control target key end

     0   :  { %9 = vsyncpa [#allocation3], 0  ;;  %s2526_s0 = inlined_call_operand.hbm [shape: bf16[256,128], index: 0, kind: input, shape index: {}]   ;;  %s2527_s1 = inlined_call_operand.hbm [shape: bf16[128,384], index: 1, kind: input, shape index: {}]   ;;  %s2528_s2 = inlined_call_operand.hbm [shape: bf16[256,256], index: 2, kind: input, shape index: {}]   ;;  %s2529_s3 = inlined_call_operand.vmem [shape: f32[1,128], index: 3, kind: input, shape index: {}]   ;;  %s2530_s4 = inlined_call_operand.hbm [shape: f32[256,128], index: 4, kind: output, shape index: {}]  }
   0x1   :  { %10 = vsyncpa [#allocation6], 0 }
   0x2   :  { %11 = vsyncpa [#allocation4], 0  ;;  %s1987_s15 = smov [#allocation5]   ;;  %s1893_s19 = scalar_lea.hbm %s2527_s1, 3072 }
   0x3   :  { %s29_s16 = sshll.u32 %s1987_s15, 4  ;;  %p1894_p0 = scmp.ne.s32.totalorder %s2527_s1, %s1893_s19  ;;  %s30_s16 = int_to_ptr.vmem [resolvable:$true] %s29_s16 }
   0x4   :  { %p1897_p1 = scmp.lt.u32.totalorder %s1893_s19, %s2527_s1 }
   0x6   :  { %p1899_p2 = pnand %p1897_p1, %p1894_p0 }
   0x8   :  { %1902 = shalt.err (!%p1899_p2)
}
   0x9   :  { %s1903_s24 = scalar_lea.vmem %s30_s16, 3072  ;;  %p1908_p4 = scmp.lt.s32.totalorder %s30_s16, %s30_s16 }
   0xa   :  { %p1904_p3 = scmp.ne.s32.totalorder %s30_s16, %s1903_s24  ;;  %p1909_p5 = scmp.lt.s32.totalorder %s1903_s24, %s1903_s24 }
   0xc   :  { %p1910_p6 = por %p1909_p5, %p1908_p4 }
   0xe   :  { %p1911_p7 = pnand %p1910_p6, %p1904_p3 }
  0x10   :  { %1914 = shalt.err (!%p1911_p7)
}
  0x11   :  { %s1988_s25 = smov 192   ;;  %s1989_s26 = smov 12  }
  0x12   :  { %35 = dma.hbm_to_vmem [thread:$0]  %s2527_s1, 3072, %s30_s16, [#allocation6], %s1988_s25, %s1988_s25, %s1989_s26  }
  0x13   :  { %s1990_s29 = smov [#allocation2]   ;;  %s1915_s7 = scalar_lea.hbm %s2526_s0, 2048 }
  0x14   :  { %s17_s30 = sshll.u32 %s1990_s29, 4  ;;  %p1916_p8 = scmp.ne.s32.totalorder %s2526_s0, %s1915_s7  ;;  %s18_s30 = int_to_ptr.vmem [resolvable:$true] %s17_s30 }
  0x15   :  { %p1919_p9 = scmp.lt.u32.totalorder %s1915_s7, %s2526_s0 }
  0x17   :  { %p1921_p10 = pnand %p1919_p9, %p1916_p8 }
  0x19   :  { %1924 = shalt.err (!%p1921_p10)
}
  0x1a   :  { %s1925_s12 = scalar_lea.vmem %s18_s30, 2048  ;;  %p1930_p12 = scmp.lt.s32.totalorder %s18_s30, %s18_s30 }
  0x1b   :  { %p1926_p11 = scmp.ne.s32.totalorder %s18_s30, %s1925_s12  ;;  %p1931_p13 = scmp.lt.s32.totalorder %s1925_s12, %s1925_s12 }
  0x1d   :  { %p1932_p0 = por %p1931_p13, %p1930_p12 }
  0x1f   :  { %p1933_p1 = pnand %p1932_p0, %p1926_p11 }
  0x21   :  { %1936 = shalt.err (!%p1933_p1)
}
  0x22   :  { %s1991_s1 = smov 64   ;;  %s1992_s13 = smov 4  }
  0x23   :  { %23 = dma.hbm_to_vmem [thread:$0]  %s2526_s0, 2048, %s18_s30, [#allocation3], %s1991_s1, %s1991_s1, %s1992_s13  }
  0x24   :  { %s1993_s16 = smov [#allocation7]   ;;  %s1937_s20 = scalar_lea.hbm %s2528_s2, 4096 }
  0x25   :  { %s41_s17 = sshll.u32 %s1993_s16, 4  ;;  %p1938_p2 = scmp.ne.s32.totalorder %s2528_s2, %s1937_s20  ;;  %s42_s17 = int_to_ptr.vmem [resolvable:$true] %s41_s17 }
  0x26   :  { %p1941_p3 = scmp.lt.u32.totalorder %s1937_s20, %s2528_s2 }
  0x28   :  { %p1943_p4 = pnand %p1941_p3, %p1938_p2 }
  0x2a   :  { %1946 = shalt.err (!%p1943_p4)
}
  0x2b   :  { %s1947_s25 = scalar_lea.vmem %s42_s17, 4096  ;;  %p1952_p6 = scmp.lt.s32.totalorder %s42_s17, %s42_s17 }
  0x2c   :  { %p1948_p5 = scmp.ne.s32.totalorder %s42_s17, %s1947_s25  ;;  %p1953_p7 = scmp.lt.s32.totalorder %s1947_s25, %s1947_s25 }
  0x2e   :  { %p1954_p8 = por %p1953_p7, %p1952_p6 }
  0x30   :  { %p1955_p9 = pnand %p1954_p8, %p1948_p5 }
  0x32   :  { %1958 = shalt.err (!%p1955_p9)
}
  0x33   :  { %s1994_s0 = smov 128   ;;  %s1995_s26 = smov 8  }
  0x34   :  { %47 = dma.hbm_to_vmem [thread:$0]  %s2528_s2, 4096, %s42_s17, [#allocation6], %s1994_s0, %s1994_s0, %s1995_s26  }
  0x35   :  { %1981 = dma.done.wait [#allocation3], 2048  }
  0x36   :  { %1982 = vsyncadd [#allocation3], 4294965248 }
  0x37   :  { %1983 = dma.done.wait [#allocation6], 7168  }
  0x38   :  { %1984 = vsyncadd [#allocation6], 4294960128  ;;  %v1996_v0 = vmov 0   ;;  %v1797_v1 = vld [vmem:[#allocation5 + $0x4] ss:$12 sps:$4 sm:$0xff]   ;;  %v2068_v22 = vld [vmem:[#allocation2 + $0x68] sm:$0xff]  }
  0x39   :  { %500 = vmatprep.mubr.bf16.mxu1 %v1996_v0  ;;  %380 = vmatprep.mubr.bf16.mxu0 %v1996_v0  ;;  %v1799_v2 = vld [vmem:[#allocation5] ss:$12 sps:$4 sm:$0xff]   ;;  %v1800_v3 = vld [vmem:[#allocation5 + $0x1c] ss:$12 sps:$4 sm:$0xff]   ;;  %v1802_v4 = vld [vmem:[#allocation5 + $0x18] ss:$12 sps:$4 sm:$0xff]  }
  0x3a   :  { %1770 = vmatprep.subr.bf16.mxu1 %v1797_v1  ;;  %348 = vmatprep.subr.bf16.mxu0 %v1797_v1  ;;  %v1803_v5 = vld [vmem:[#allocation5 + $0x34] ss:$12 sps:$4 sm:$0xff]   ;;  %v1805_v6 = vld [vmem:[#allocation5 + $0x30] ss:$12 sps:$4 sm:$0xff]   ;;  %v1806_v7 = vld [vmem:[#allocation5 + $0x4c] ss:$12 sps:$4 sm:$0xff]  }
  0x3b   :  { %1778 = vmatpush1.bf16.msra.mxu1 %v1799_v2  ;;  %349 = vmatpush1.bf16.msra.mxu0 %v1799_v2  ;;  %v1808_v8 = vld [vmem:[#allocation5 + $0x48] ss:$12 sps:$4 sm:$0xff]   ;;  %v1809_v9 = vld [vmem:[#allocation5 + $0x64] ss:$12 sps:$4 sm:$0xff]   ;;  %v1811_v10 = vld [vmem:[#allocation5 + $0x60] ss:$12 sps:$4 sm:$0xff]  }
  0x3c   :  { %1771 = vmatprep.subr.bf16.mxu1 %v1800_v3  ;;  %350 = vmatprep.subr.bf16.mxu0 %v1800_v3  ;;  %v1812_v11 = vld [vmem:[#allocation5 + $0x7c] ss:$12 sps:$4 sm:$0xff]   ;;  %v1814_v12 = vld [vmem:[#allocation5 + $0x78] ss:$12 sps:$4 sm:$0xff]   ;;  %v1815_v13 = vld [vmem:[#allocation5 + $0x94] ss:$12 sps:$4 sm:$0xff]  }
  0x3d   :  { %v1817_v14 = vld [vmem:[#allocation5 + $0x90] ss:$12 sps:$4 sm:$0xff]   ;;  %v1818_v15 = vld [vmem:[#allocation5 + $0xac] ss:$12 sps:$4 sm:$0xff]   ;;  %v1820_v16 = vld [vmem:[#allocation5 + $0xa8] ss:$12 sps:$4 sm:$0xff]  }
  0x3e   :  { %v1822_v17 = vld [vmem:[#allocation5 + $0x8] ss:$12 sps:$4 sm:$0xff]   ;;  %v2064_v18 = vld [vmem:[#allocation2 + $0x60] sm:$0xff]   ;;  %v1826_v23 = vld [vmem:[#allocation5 + $0x50] ss:$12 sps:$4 sm:$0xff]  }
  0x3f   :  { %1779 = vmatpush1.bf16.msra.mxu1 %v1802_v4  ;;  %351 = vmatpush1.bf16.msra.mxu0 %v1802_v4  ;;  %v1823_v19 = vld [vmem:[#allocation5 + $0x20] ss:$12 sps:$4 sm:$0xff]   ;;  %v1825_v21 = vld [vmem:[#allocation5 + $0x38] ss:$12 sps:$4 sm:$0xff]   ;;  %v1828_v25 = vld [vmem:[#allocation5 + $0x68] ss:$12 sps:$4 sm:$0xff]  }
  0x40   :  { %1772 = vmatprep.subr.bf16.mxu1 %v1803_v5  ;;  %352 = vmatprep.subr.bf16.mxu0 %v1803_v5  ;;  %v1833_v20 = vld [vmem:[#allocation2] sm:$0xff]   ;;  %v1834_v24 = vld [vmem:[#allocation2 + $0x8] sm:$0xff]   ;;  %v1827_v26 = vld [vmem:[#allocation2 + $0x70] sm:$0xff]  }
  0x41   :  { %v1829_v27 = vld [vmem:[#allocation5 + $0x80] ss:$12 sps:$4 sm:$0xff]   ;;  %v1835_v28 = vld [vmem:[#allocation2 + $0x10] sm:$0xff]   ;;  %v1831_v29 = vld [vmem:[#allocation5 + $0x98] ss:$12 sps:$4 sm:$0xff]  }
  0x42   :  { %v1830_v30 = vld [vmem:[#allocation2 + $0x78] sm:$0xff]   ;;  %v1837_v33 = vld [vmem:[#allocation2 + $0x20] sm:$0xff]   ;;  %v1838_v34 = vld [vmem:[#allocation2 + $0x28] sm:$0xff]  }
  0x43   :  { %1780 = vmatpush1.bf16.msra.mxu1 %v1805_v6  ;;  %353 = vmatpush1.bf16.msra.mxu0 %v1805_v6  ;;  %v1832_v31 = vld [vmem:[#allocation5 + $0xb0] ss:$12 sps:$4 sm:$0xff]   ;;  %v1841_v37 = vld [vmem:[#allocation2 + $0x40] sm:$0xff]   ;;  %v1842_v38 = vld [vmem:[#allocation2 + $0x48] sm:$0xff]  }
  0x44   :  { %1773 = vmatprep.subr.bf16.mxu1 %v1806_v7  ;;  %354 = vmatprep.subr.bf16.mxu0 %v1806_v7  ;;  %v1836_v32 = vld [vmem:[#allocation2 + $0x18] sm:$0xff]   ;;  %v1839_v35 = vld [vmem:[#allocation2 + $0x30] sm:$0xff]   ;;  %v1847_v41 = vld [vmem:[#allocation7 + $0x4] ss:$8 sps:$4 sm:$0xff]  }
  0x45   :  { %v1840_v36 = vld [vmem:[#allocation2 + $0x38] sm:$0xff]   ;;  %v1843_v39 = vld [vmem:[#allocation2 + $0x50] sm:$0xff]  }
  0x46   :  { %v1844_v40 = vld [vmem:[#allocation2 + $0x58] sm:$0xff]  }
  0x47   :  { %1781 = vmatpush1.bf16.msra.mxu1 %v1808_v8  ;;  %355 = vmatpush1.bf16.msra.mxu0 %v1808_v8 }
  0x48   :  { %1774 = vmatprep.subr.bf16.mxu1 %v1809_v9  ;;  %356 = vmatprep.subr.bf16.mxu0 %v1809_v9 }
  0x4b   :  { %1782 = vmatpush1.bf16.msra.mxu1 %v1811_v10  ;;  %357 = vmatpush1.bf16.msra.mxu0 %v1811_v10 }
  0x4c   :  { %1775 = vmatprep.subr.bf16.mxu1 %v1812_v11  ;;  %358 = vmatprep.subr.bf16.mxu0 %v1812_v11 }
  0x4f   :  { %1783 = vmatpush1.bf16.msra.mxu1 %v1814_v12  ;;  %359 = vmatpush1.bf16.msra.mxu0 %v1814_v12 }
  0x50   :  { %1776 = vmatprep.subr.bf16.mxu1 %v1815_v13  ;;  %360 = vmatprep.subr.bf16.mxu0 %v1815_v13 }
  0x53   :  { %1784 = vmatpush1.bf16.msra.mxu1 %v1817_v14  ;;  %361 = vmatpush1.bf16.msra.mxu0 %v1817_v14 }
  0x54   :  { %1777 = vmatprep.subr.bf16.mxu1 %v1818_v15  ;;  %362 = vmatprep.subr.bf16.mxu0 %v1818_v15 }
  0x57   :  { %1785 = vmatpush1.bf16.msra.mxu1 %v1820_v16  ;;  %363 = vmatpush1.bf16.msra.mxu0 %v1820_v16 }
  0x58   :  { %1722 = vmatprep.subr.bf16.mxu1 %v1822_v17 }
  0x5a   :  { %501 = vmatmul.mubr.bf16.vlgmr.msra.gmra.mrb[0].mxu1 %v2064_v18  ;;  %381 = vmatmul.mubr.bf16.vlgmr.msra.gmra.mrb[0].mxu0 %v1833_v20 }
  0x5b   :  { %1723 = vmatpush3.bf16.msra.mxu1 %v1822_v17  ;;  %510 = vmatprep.mubr.bf16.mxu1 %v1996_v0 }
  0x5c   :  { %1724 = vmatprep.subr.bf16.mxu1 %v1823_v19  ;;  %390 = vmatprep.mubr.bf16.mxu0 %v1996_v0 }
  0x5f   :  { %1725 = vmatpush3.bf16.msra.mxu1 %v1823_v19 }
  0x60   :  { %1726 = vmatprep.subr.bf16.mxu1 %v1825_v21 }
  0x62   :  { %511 = vmatmul.mubr.bf16.gmra.mrb[4].mxu1 %v2068_v22  ;;  %391 = vmatmul.mubr.bf16.gmra.mrb[4].mxu0 %v1834_v24 }
  0x63   :  { %1727 = vmatpush3.bf16.msra.mxu1 %v1825_v21  ;;  %520 = vmatprep.mubr.bf16.mxu1 %v1996_v0 }
  0x64   :  { %1728 = vmatprep.subr.bf16.mxu1 %v1826_v23  ;;  %400 = vmatprep.mubr.bf16.mxu0 %v1996_v0 }
  0x67   :  { %1729 = vmatpush3.bf16.msra.mxu1 %v1826_v23 }
  0x68   :  { %1730 = vmatprep.subr.bf16.mxu1 %v1828_v25 }
  0x6a   :  { %521 = vmatmul.mubr.bf16.gmra.mrb[8].mxu1 %v1827_v26  ;;  %401 = vmatmul.mubr.bf16.gmra.mrb[8].mxu0 %v1835_v28 }
  0x6b   :  { %1731 = vmatpush3.bf16.msra.mxu1 %v1828_v25  ;;  %530 = vmatprep.mubr.bf16.mxu1 %v1996_v0 }
  0x6c   :  { %1732 = vmatprep.subr.bf16.mxu1 %v1829_v27  ;;  %410 = vmatprep.mubr.bf16.mxu0 %v1996_v0 }
  0x6f   :  { %1733 = vmatpush3.bf16.msra.mxu1 %v1829_v27 }
  0x70   :  { %1734 = vmatprep.subr.bf16.mxu1 %v1831_v29 }
  0x72   :  { %531 = vmatmul.mubr.bf16.gmra.mrb[12].mxu1 %v1830_v30  ;;  %411 = vmatmul.mubr.bf16.gmra.mrb[12].mxu0 %v1836_v32 }
  0x73   :  { %1735 = vmatpush3.bf16.msra.mxu1 %v1831_v29  ;;  %1738 = vmatprep.mubr.bf16.mxu1 %v1833_v20 }
  0x74   :  { %1736 = vmatprep.subr.bf16.mxu1 %v1832_v31  ;;  %420 = vmatprep.mubr.bf16.mxu0 %v1996_v0 }
  0x77   :  { %1737 = vmatpush3.bf16.msra.mxu1 %v1832_v31 }
  0x7a   :  { %1739 = vmatmul.mubr.bf16.vlgmr.msra.gmra.mrb[16].mxu1 %v1834_v24  ;;  %421 = vmatmul.mubr.bf16.gmra.mrb[16].mxu0 %v1837_v33 }
  0x7b   :  { %1742 = vmatprep.mubr.bf16.mxu1 %v1835_v28  ;;  %430 = vmatprep.mubr.bf16.mxu0 %v1996_v0 }
  0x82   :  { %1743 = vmatmul.mubr.bf16.gmra.mrb[20].mxu1 %v1836_v32  ;;  %431 = vmatmul.mubr.bf16.gmra.mrb[20].mxu0 %v1838_v34 }
  0x83   :  { %1746 = vmatprep.mubr.bf16.mxu1 %v1837_v33  ;;  %440 = vmatprep.mubr.bf16.mxu0 %v1996_v0 }
  0x8a   :  { %1747 = vmatmul.mubr.bf16.gmra.mrb[24].mxu1 %v1838_v34  ;;  %441 = vmatmul.mubr.bf16.gmra.mrb[24].mxu0 %v1839_v35 }
  0x8b   :  { %1750 = vmatprep.mubr.bf16.mxu1 %v1839_v35  ;;  %450 = vmatprep.mubr.bf16.mxu0 %v1996_v0 }
  0x92   :  { %1751 = vmatmul.mubr.bf16.gmra.mrb[28].mxu1 %v1840_v36  ;;  %451 = vmatmul.mubr.bf16.gmra.mrb[28].mxu0 %v1840_v36 }
  0x93   :  { %1754 = vmatprep.mubr.bf16.mxu1 %v1841_v37  ;;  %460 = vmatprep.mubr.bf16.mxu0 %v1996_v0 }
  0x9a   :  { %1755 = vmatmul.mubr.bf16.gmra.mrb[32].mxu1 %v1842_v38  ;;  %461 = vmatmul.mubr.bf16.gmra.mrb[32].mxu0 %v1841_v37 }
  0x9b   :  { %1758 = vmatprep.mubr.bf16.mxu1 %v1843_v39  ;;  %470 = vmatprep.mubr.bf16.mxu0 %v1996_v0 }
  0xa2   :  { %1759 = vmatmul.mubr.bf16.gmra.mrb[36].mxu1 %v1844_v40  ;;  %471 = vmatmul.mubr.bf16.gmra.mrb[36].mxu0 %v1842_v38 }
  0xa3   :  { %1762 = vmatprep.mubr.bf16.mxu1 %v2064_v18  ;;  %480 = vmatprep.mubr.bf16.mxu0 %v1996_v0 }
  0xaa   :  { %1763 = vmatmul.mubr.bf16.gmra.mrb[40].mxu1 %v2068_v22  ;;  %481 = vmatmul.mubr.bf16.gmra.mrb[40].mxu0 %v1843_v39 }
  0xab   :  { %1766 = vmatprep.mubr.bf16.mxu1 %v1827_v26  ;;  %490 = vmatprep.mubr.bf16.mxu0 %v1996_v0 }
  0xb2   :  { %1767 = vmatmul.mubr.bf16.gmra.mrb[44].mxu1 %v1830_v30  ;;  %491 = vmatmul.mubr.bf16.gmra.mrb[44].mxu0 %v1844_v40 }
  0xb3   :  { %942 = vmatprep.mubr.bf16.mxu1 %v1847_v41  ;;  %1151 = vmatprep.mubr.bf16.mxu0 %v1847_v41 }
 0x12d   :  { %v2086_v42 = vpop.f32.mrb[0].mxu1 }
 0x12e   :  { %2546 = vst [vmem:[#allocation12_spill] sm:$0xff] %v2086_v42  ;;  %v2088_v43 = vpop.f32.mrb[1].mxu1 }
 0x12f   :  { %v2090_v44 = vpop.f32.mrb[2].mxu1 }
 0x130   :  { %2547 = vst [vmem:[#allocation13_spill] sm:$0xff] %v2090_v44  ;;  %v2092_v45 = vpop.f32.mrb[3].mxu1 }
 0x135   :  { %v2094_v46 = vpop.f32.mrb[4].mxu1 }
 0x136   :  { %2548 = vst [vmem:[#allocation14_spill] sm:$0xff] %v2094_v46  ;;  %v2096_v47 = vpop.f32.mrb[5].mxu1 }
 0x137   :  { %v2098_v48 = vpop.f32.mrb[6].mxu1 }
 0x138   :  { %2549 = vst [vmem:[#allocation15_spill] sm:$0xff] %v2098_v48  ;;  %v2100_v49 = vpop.f32.mrb[7].mxu1 }
 0x13d   :  { %v2102_v50 = vpop.f32.mrb[8].mxu1 }
 0x13e   :  { %2550 = vst [vmem:[#allocation16_spill] sm:$0xff] %v2102_v50  ;;  %v2104_v51 = vpop.f32.mrb[9].mxu1 }
 0x13f   :  { %v2106_v52 = vpop.f32.mrb[10].mxu1 }
 0x140   :  { %2551 = vst [vmem:[#allocation17_spill] sm:$0xff] %v2106_v52  ;;  %v2108_v53 = vpop.f32.mrb[11].mxu1 }
 0x145   :  { %v2110_v54 = vpop.f32.mrb[12].mxu1 }
 0x146   :  { %2552 = vst [vmem:[#allocation18_spill] sm:$0xff] %v2110_v54  ;;  %v2112_v55 = vpop.f32.mrb[13].mxu1 }
 0x147   :  { %v2114_v56 = vpop.f32.mrb[14].mxu1 }
 0x148   :  { %2553 = vst [vmem:[#allocation19_spill] sm:$0xff] %v2114_v56  ;;  %v2116_v57 = vpop.f32.mrb[15].mxu1 }
 0x14d   :  { %v1740_v58 = vpop.f32.mrb[16].mxu1 }
 0x14e   :  { %v575_v59 = vpop.f32.mrb[17].mxu1 }
 0x14f   :  { %v1741_v60 = vpop.f32.mrb[18].mxu1 }
 0x150   :  { %v735_v61 = vpack.c.bf16 %v1741_v60, %v1740_v58  ;;  %v578_v62 = vpop.f32.mrb[19].mxu1  ;;  %v2118_v58 = vpop.f32.mrb[0].mxu0  ;;  %v2122_v60 = vld [vmem:[#allocation7] ss:$8 sps:$4 sm:$0xff]  }
 0x151   :  { %v734_v63 = vpack.c.bf16 %v578_v62, %v575_v59  ;;  %2554 = vst [vmem:[#allocation20_spill] sm:$0xff] %v2118_v58  ;;  %v2120_v59 = vpop.f32.mrb[1].mxu0  ;;  %v2128_v62 = vld [vmem:[#allocation7 + $0x10] ss:$8 sps:$4 sm:$0xff]  }
 0x155   :  { %v1744_v0 = vpop.f32.mrb[20].mxu1 }
 0x156   :  { %v591_v1 = vpop.f32.mrb[21].mxu1 }
 0x157   :  { %v1745_v2 = vpop.f32.mrb[22].mxu1 }
 0x158   :  { %v737_v3 = vpack.c.bf16 %v1745_v2, %v1744_v0  ;;  %v594_v4 = vpop.f32.mrb[23].mxu1  ;;  %v2134_v0 = vld [vmem:[#allocation7 + $0x20] ss:$8 sps:$4 sm:$0xff]   ;;  %v2140_v2 = vld [vmem:[#allocation7 + $0x30] ss:$8 sps:$4 sm:$0xff]  }
 0x159   :  { %v736_v5 = vpack.c.bf16 %v594_v4, %v591_v1  ;;  %v2136_v1 = vld [vmem:[#allocation7 + $0x34] ss:$8 sps:$4 sm:$0xff]   ;;  %v2146_v4 = vld [vmem:[#allocation7 + $0x40] ss:$8 sps:$4 sm:$0xff]  }
 0x15d   :  { %v1748_v6 = vpop.f32.mrb[24].mxu1 }
 0x15e   :  { %v607_v7 = vpop.f32.mrb[25].mxu1 }
 0x15f   :  { %v1749_v8 = vpop.f32.mrb[26].mxu1 }
 0x160   :  { %v739_v9 = vpack.c.bf16 %v1749_v8, %v1748_v6  ;;  %v610_v10 = vpop.f32.mrb[27].mxu1  ;;  %v2152_v6 = vld [vmem:[#allocation7 + $0x50] ss:$8 sps:$4 sm:$0xff]   ;;  %v2158_v8 = vld [vmem:[#allocation7 + $0x60] ss:$8 sps:$4 sm:$0xff]  }
 0x161   :  { %v738_v11 = vpack.c.bf16 %v610_v10, %v607_v7  ;;  %v2154_v7 = vld [vmem:[#allocation7 + $0x64] ss:$8 sps:$4 sm:$0xff]   ;;  %v2164_v10 = vld [vmem:[#allocation7 + $0x70] ss:$8 sps:$4 sm:$0xff]  }
 0x165   :  { %v1752_v12 = vpop.f32.mrb[28].mxu1 }
 0x166   :  { %v623_v13 = vpop.f32.mrb[29].mxu1 }
 0x167   :  { %v1753_v14 = vpop.f32.mrb[30].mxu1 }
 0x168   :  { %v741_v15 = vpack.c.bf16 %v1753_v14, %v1752_v12  ;;  %v626_v16 = vpop.f32.mrb[31].mxu1  ;;  %v2170_v12 = vld [vmem:[#allocation7 + $0x80] ss:$8 sps:$4 sm:$0xff]   ;;  %v2176_v14 = vld [vmem:[#allocation7 + $0x90] ss:$8 sps:$4 sm:$0xff]  }
 0x169   :  { %v740_v17 = vpack.c.bf16 %v626_v16, %v623_v13  ;;  %2555 = vst [vmem:[#allocation21_spill] sm:$0xff] %v2170_v12  ;;  %v2172_v13 = vld [vmem:[#allocation7 + $0x94] ss:$8 sps:$4 sm:$0xff]   ;;  %2557 = vst [vmem:[#allocation23_spill] sm:$0xff] %v2176_v14  ;;  %v2182_v16 = vld [vmem:[#allocation7 + $0xa0] ss:$8 sps:$4 sm:$0xff]  }
 0x16a   :  { %2556 = vst [vmem:[#allocation22_spill] sm:$0xff] %v2172_v13  ;;  %2559 = vst [vmem:[#allocation25_spill] sm:$0xff] %v2182_v16 }
 0x16d   :  { %v1756_v18 = vpop.f32.mrb[32].mxu1 }
 0x16e   :  { %v639_v19 = vpop.f32.mrb[33].mxu1 }
 0x16f   :  { %v1757_v20 = vpop.f32.mrb[34].mxu1 }
 0x170   :  { %v743_v21 = vpack.c.bf16 %v1757_v20, %v1756_v18  ;;  %v642_v22 = vpop.f32.mrb[35].mxu1  ;;  %v2188_v18 = vpop.f32.mrb[2].mxu0  ;;  %v2192_v20 = vld [vmem:[#allocation7 + $0xc4] ss:$8 sps:$4 sm:$0xff]  }
 0x171   :  { %v742_v23 = vpack.c.bf16 %v642_v22, %v639_v19  ;;  %2561 = vst [vmem:[#allocation27_spill] sm:$0xff] %v2188_v18  ;;  %v2190_v19 = vld [vmem:[#allocation7 + $0xb0] ss:$8 sps:$4 sm:$0xff]   ;;  %2563 = vst [vmem:[#allocation29_spill] sm:$0xff] %v2192_v20 }
 0x172   :  { %2562 = vst [vmem:[#allocation28_spill] sm:$0xff] %v2190_v19 }
 0x173   :  { %1498 = vmatprep.subr.bf16.mxu1 %v742_v23  ;;  %v2200_v23 = vld [vmem:[#allocation7 + $0xc0] ss:$8 sps:$4 sm:$0xff]  }
 0x174   :  { %1499 = vmatpush3.bf16.msra.mxu1 %v734_v63  ;;  %v2130_v63 = vld [vmem:[#allocation7 + $0x24] ss:$8 sps:$4 sm:$0xff]   ;;  %2565 = vst [vmem:[#allocation31_spill] sm:$0xff] %v2200_v23 }
 0x175   :  { %v1760_v24 = vpop.f32.mrb[36].mxu1  ;;  %1500 = vmatprep.subr.bf16.mxu1 %v743_v21  ;;  %v2194_v21 = vpop.f32.mrb[3].mxu0 }
 0x176   :  { %v655_v25 = vpop.f32.mrb[37].mxu1  ;;  %v2198_v22 = vpop.f32.mrb[4].mxu0 }
 0x177   :  { %v1761_v26 = vpop.f32.mrb[38].mxu1  ;;  %2564 = vst [vmem:[#allocation30_spill] sm:$0xff] %v2198_v22 }
 0x178   :  { %v745_v27 = vpack.c.bf16 %v1761_v26, %v1760_v24  ;;  %v658_v28 = vpop.f32.mrb[39].mxu1  ;;  %1501 = vmatpush3.bf16.msra.mxu1 %v735_v61  ;;  %v2124_v61 = vld [vmem:[#allocation7 + $0x14] ss:$8 sps:$4 sm:$0xff]   ;;  %v2202_v24 = vpop.f32.mrb[5].mxu0 }
 0x179   :  { %v744_v29 = vpack.c.bf16 %v658_v28, %v655_v25  ;;  %v2204_v25 = vld [vmem:[#allocation7 + $0xd4] ss:$8 sps:$4 sm:$0xff]   ;;  %v2206_v26 = vpop.f32.mrb[6].mxu0 }
 0x17a   :  { %2566 = vst [vmem:[#allocation32_spill] sm:$0xff] %v2204_v25  ;;  %2567 = vst [vmem:[#allocation33_spill] sm:$0xff] %v2206_v26 }
 0x17b   :  { %1502 = vmatprep.subr.bf16.mxu1 %v744_v29  ;;  %v2214_v29 = vld [vmem:[#allocation7 + $0xd0] ss:$8 sps:$4 sm:$0xff]  }
 0x17c   :  { %1503 = vmatpush3.bf16.msra.mxu1 %v736_v5  ;;  %v2148_v5 = vld [vmem:[#allocation7 + $0x54] ss:$8 sps:$4 sm:$0xff]   ;;  %2569 = vst [vmem:[#allocation35_spill] sm:$0xff] %v2214_v29 }
 0x17d   :  { %v1764_v30 = vpop.f32.mrb[40].mxu1  ;;  %1504 = vmatprep.subr.bf16.mxu1 %v745_v27  ;;  %v2208_v27 = vpop.f32.mrb[7].mxu0 }
 0x17e   :  { %v671_v31 = vpop.f32.mrb[41].mxu1  ;;  %v2212_v28 = vpop.f32.mrb[8].mxu0 }
 0x17f   :  { %v1765_v32 = vpop.f32.mrb[42].mxu1  ;;  %2568 = vst [vmem:[#allocation34_spill] sm:$0xff] %v2212_v28 }
 0x180   :  { %v747_v33 = vpack.c.bf16 %v1765_v32, %v1764_v30  ;;  %v674_v34 = vpop.f32.mrb[43].mxu1  ;;  %1505 = vmatpush3.bf16.msra.mxu1 %v737_v3  ;;  %v2142_v3 = vld [vmem:[#allocation7 + $0x44] ss:$8 sps:$4 sm:$0xff]   ;;  %v2216_v30 = vpop.f32.mrb[9].mxu0 }
 0x181   :  { %v746_v35 = vpack.c.bf16 %v674_v34, %v671_v31  ;;  %v2218_v31 = vld [vmem:[#allocation7 + $0xe4] ss:$8 sps:$4 sm:$0xff]   ;;  %v2220_v32 = vpop.f32.mrb[10].mxu0 }
 0x182   :  { %2570 = vst [vmem:[#allocation36_spill] sm:$0xff] %v2218_v31  ;;  %2571 = vst [vmem:[#allocation37_spill] sm:$0xff] %v2220_v32 }
 0x183   :  { %1506 = vmatprep.subr.bf16.mxu1 %v746_v35  ;;  %v2228_v35 = vld [vmem:[#allocation7 + $0xe0] ss:$8 sps:$4 sm:$0xff]  }
 0x184   :  { %1507 = vmatpush3.bf16.msra.mxu1 %v738_v11  ;;  %v2166_v11 = vld [vmem:[#allocation7 + $0x84] ss:$8 sps:$4 sm:$0xff]   ;;  %2573 = vst [vmem:[#allocation39_spill] sm:$0xff] %v2228_v35 }
 0x185   :  { %v1768_v36 = vpop.f32.mrb[44].mxu1  ;;  %1508 = vmatprep.subr.bf16.mxu1 %v747_v33  ;;  %v2222_v33 = vpop.f32.mrb[11].mxu0 }
 0x186   :  { %v687_v37 = vpop.f32.mrb[45].mxu1  ;;  %v2226_v34 = vpop.f32.mrb[12].mxu0 }
 0x187   :  { %v1769_v38 = vpop.f32.mrb[46].mxu1  ;;  %2572 = vst [vmem:[#allocation38_spill] sm:$0xff] %v2226_v34 }
 0x188   :  { %v749_v39 = vpack.c.bf16 %v1769_v38, %v1768_v36  ;;  %v690_v40 = vpop.f32.mrb[47].mxu1  ;;  %1509 = vmatpush3.bf16.msra.mxu1 %v739_v9  ;;  %v2160_v9 = vld [vmem:[#allocation7 + $0x74] ss:$8 sps:$4 sm:$0xff]   ;;  %v2230_v36 = vpop.f32.mrb[13].mxu0 }
 0x189   :  { %v748_v41 = vpack.c.bf16 %v690_v40, %v687_v37  ;;  %v2232_v37 = vld [vmem:[#allocation7 + $0xf4] ss:$8 sps:$4 sm:$0xff]   ;;  %v2234_v38 = vpop.f32.mrb[14].mxu0 }
 0x18a   :  { %2574 = vst [vmem:[#allocation40_spill] sm:$0xff] %v2232_v37  ;;  %2575 = vst [vmem:[#allocation41_spill] sm:$0xff] %v2234_v38 }
 0x18b   :  { %1510 = vmatprep.subr.bf16.mxu1 %v748_v41  ;;  %v2242_v41 = vld [vmem:[#allocation7 + $0xf0] ss:$8 sps:$4 sm:$0xff]  }
 0x18c   :  { %1511 = vmatpush3.bf16.msra.mxu1 %v740_v17  ;;  %v2184_v17 = vld [vmem:[#allocation7 + $0xb4] ss:$8 sps:$4 sm:$0xff]   ;;  %2577 = vst [vmem:[#allocation43_spill] sm:$0xff] %v2242_v41 }
 0x18d   :  { %1512 = vmatprep.subr.bf16.mxu1 %v749_v39  ;;  %2560 = vst [vmem:[#allocation26_spill] sm:$0xff] %v2184_v17  ;;  %v2236_v39 = vpop.f32.mrb[15].mxu0 }
 0x18e   :  { %v2240_v40 = vpop.f32.mrb[16].mxu0 }
 0x18f   :  { %2576 = vst [vmem:[#allocation42_spill] sm:$0xff] %v2240_v40  ;;  %v2244_v56 = vpop.f32.mrb[17].mxu0 }
 0x190   :  { %1513 = vmatpush3.bf16.msra.mxu1 %v741_v15  ;;  %v2178_v15 = vld [vmem:[#allocation7 + $0xa4] ss:$8 sps:$4 sm:$0xff]   ;;  %v2246_v54 = vpop.f32.mrb[18].mxu0 }
 0x191   :  { %2558 = vst [vmem:[#allocation24_spill] sm:$0xff] %v2178_v15  ;;  %2578 = vst [vmem:[#allocation44_spill] sm:$0xff] %v2246_v54  ;;  %v2248_v52 = vpop.f32.mrb[19].mxu0 }
 0x192   :  { %v2251_v50 = vpop.f32.mrb[20].mxu0 }
 0x193   :  { %943 = vmatmul.mubr.bf16.vlgmr.msra.gmra.mrb[48].mxu1 %v2122_v60  ;;  %2579 = vst [vmem:[#allocation45_spill] sm:$0xff] %v2251_v50  ;;  %v2253_v48 = vpop.f32.mrb[21].mxu0 }
 0x194   :  { %950 = vmatprep.mubr.bf16.mxu1 %v2124_v61  ;;  %v2255_v46 = vpop.f32.mrb[22].mxu0 }
 0x195   :  { %2580 = vst [vmem:[#allocation46_spill] sm:$0xff] %v2255_v46  ;;  %v2257_v44 = vpop.f32.mrb[23].mxu0 }
 0x196   :  { %v2259_v42 = vpop.f32.mrb[24].mxu0 }
 0x197   :  { %2581 = vst [vmem:[#allocation47_spill] sm:$0xff] %v2259_v42  ;;  %v2261_v40 = vpop.f32.mrb[25].mxu0 }
 0x198   :  { %v2263_v38 = vpop.f32.mrb[26].mxu0 }
 0x199   :  { %2582 = vst [vmem:[#allocation48_spill] sm:$0xff] %v2263_v38  ;;  %v2265_v34 = vpop.f32.mrb[27].mxu0 }
 0x19a   :  { %v2267_v54 = vpop.f32.mrb[28].mxu0 }
 0x19b   :  { %951 = vmatmul.mubr.bf16.gmra.mrb[52].mxu1 %v2128_v62  ;;  %2583 = vst [vmem:[#allocation49_spill] sm:$0xff] %v2267_v54  ;;  %v2269_v32 = vpop.f32.mrb[29].mxu0 }
 0x19c   :  { %958 = vmatprep.mubr.bf16.mxu1 %v2130_v63  ;;  %v2271_v28 = vpop.f32.mrb[30].mxu0 }
 0x19d   :  { %2584 = vst [vmem:[#allocation50_spill] sm:$0xff] %v2271_v28  ;;  %v2273_v50 = vpop.f32.mrb[31].mxu0 }
 0x19e   :  { %v2275_v26 = vpop.f32.mrb[32].mxu0 }
 0x19f   :  { %2585 = vst [vmem:[#allocation51_spill] sm:$0xff] %v2275_v26  ;;  %v2277_v46 = vpop.f32.mrb[33].mxu0 }
 0x1a0   :  { %v2279_v22 = vpop.f32.mrb[34].mxu0 }
 0x1a1   :  { %2586 = vst [vmem:[#allocation52_spill] sm:$0xff] %v2279_v22  ;;  %v2281_v42 = vpop.f32.mrb[35].mxu0 }
 0x1a2   :  { %v2283_v18 = vpop.f32.mrb[36].mxu0 }
 0x1a3   :  { %959 = vmatmul.mubr.bf16.gmra.mrb[56].mxu1 %v2134_v0  ;;  %2587 = vst [vmem:[#allocation53_spill] sm:$0xff] %v2283_v18  ;;  %v2285_v38 = vpop.f32.mrb[37].mxu0 }
 0x1a4   :  { %966 = vmatprep.mubr.bf16.mxu1 %v2136_v1  ;;  %v2287_v58 = vpop.f32.mrb[38].mxu0 }
 0x1a5   :  { %2588 = vst [vmem:[#allocation54_spill] sm:$0xff] %v2287_v58  ;;  %v2289_v54 = vpop.f32.mrb[39].mxu0 }
 0x1ab   :  { %967 = vmatmul.mubr.bf16.gmra.mrb[60].mxu1 %v2140_v2 }
 0x1ac   :  { %974 = vmatprep.mubr.bf16.mxu1 %v2142_v3 }
 0x1b3   :  { %975 = vmatmul.mubr.bf16.gmra.mrb[64].mxu1 %v2146_v4 }
 0x1b4   :  { %982 = vmatprep.mubr.bf16.mxu1 %v2148_v5 }
 0x1bb   :  { %983 = vmatmul.mubr.bf16.gmra.mrb[68].mxu1 %v2152_v6 }
 0x1bc   :  { %990 = vmatprep.mubr.bf16.mxu1 %v2154_v7 }
 0x1c3   :  { %991 = vmatmul.mubr.bf16.gmra.mrb[72].mxu1 %v2158_v8 }
 0x1c4   :  { %998 = vmatprep.mubr.bf16.mxu1 %v2160_v9 }
 0x1cb   :  { %999 = vmatmul.mubr.bf16.gmra.mrb[76].mxu1 %v2164_v10 }
 0x1cc   :  { %1006 = vmatprep.mubr.bf16.mxu1 %v2166_v11 }
 0x1d3   :  { %1007 = vmatmul.mubr.bf16.gmra.mrb[80].mxu1 %v2170_v12 }
 0x1d4   :  { %1014 = vmatprep.mubr.bf16.mxu1 %v2172_v13 }
 0x1db   :  { %1015 = vmatmul.mubr.bf16.gmra.mrb[84].mxu1 %v2176_v14 }
 0x1dc   :  { %1022 = vmatprep.mubr.bf16.mxu1 %v2178_v15 }
 0x1e3   :  { %1023 = vmatmul.mubr.bf16.gmra.mrb[88].mxu1 %v2182_v16 }
 0x1e4   :  { %1030 = vmatprep.mubr.bf16.mxu1 %v2184_v17 }
 0x1eb   :  { %1031 = vmatmul.mubr.bf16.gmra.mrb[92].mxu1 %v2190_v19 }
 0x1ec   :  { %1038 = vmatprep.mubr.bf16.mxu1 %v2192_v20 }
 0x1f3   :  { %1039 = vmatmul.mubr.bf16.gmra.mrb[96].mxu1 %v2200_v23 }
 0x1f4   :  { %1046 = vmatprep.mubr.bf16.mxu1 %v2204_v25 }
 0x1fb   :  { %1047 = vmatmul.mubr.bf16.gmra.mrb[100].mxu1 %v2214_v29 }
 0x1fc   :  { %1054 = vmatprep.mubr.bf16.mxu1 %v2218_v31 }
 0x203   :  { %1055 = vmatmul.mubr.bf16.gmra.mrb[104].mxu1 %v2228_v35 }
 0x204   :  { %1062 = vmatprep.mubr.bf16.mxu1 %v2232_v37 }
 0x20b   :  { %1063 = vmatmul.mubr.bf16.gmra.mrb[108].mxu1 %v2242_v41  ;;  %v2291_v41 = vpop.f32.mrb[40].mxu0 }
 0x20c   :  { %2589 = vst [vmem:[#allocation55_spill] sm:$0xff] %v2291_v41  ;;  %v2293_v28 = vpop.f32.mrb[41].mxu0 }
 0x20d   :  { %v2295_v37 = vpop.f32.mrb[42].mxu0 }
 0x20e   :  { %2590 = vst [vmem:[#allocation56_spill] sm:$0xff] %v2295_v37  ;;  %v2297_v26 = vpop.f32.mrb[43].mxu0 }
 0x20f   :  { %v2299_v35 = vpop.f32.mrb[44].mxu0 }
 0x210   :  { %2591 = vst [vmem:[#allocation57_spill] sm:$0xff] %v2299_v35  ;;  %v2301_v22 = vpop.f32.mrb[45].mxu0 }
 0x211   :  { %v2303_v31 = vpop.f32.mrb[46].mxu0 }
 0x212   :  { %2592 = vst [vmem:[#allocation58_spill] sm:$0xff] %v2303_v31  ;;  %v2305_v18 = vpop.f32.mrb[47].mxu0 }
 0x266   :  { %v1514_v29 = vpop.f32.mrb[48].mxu1 }
 0x267   :  { %v1515_v58 = vpop.f32.mrb[49].mxu1 }
 0x268   :  { %v1516_v25 = vadd.f32 %v1515_v58, %v1514_v29  ;;  %v1517_v23 = vpop.f32.mrb[50].mxu1 }
 0x269   :  { %v1518_v20 = vpop.f32.mrb[51].mxu1 }
 0x26a   :  { %v2308_v41 = vadd.f32 %v1516_v25, %v2120_v59  ;;  %v1519_v19 = vadd.f32 %v1518_v20, %v1517_v23 }
 0x26c   :  { %v2311_v37 = vadd.f32 %v1519_v19, %v2194_v21 }
 0x26e   :  { %v1520_v17 = vpop.f32.mrb[52].mxu1 }
 0x26f   :  { %v1521_v16 = vpop.f32.mrb[53].mxu1 }
 0x270   :  { %v1522_v31 = vadd.f32 %v1521_v16, %v1520_v17  ;;  %v1523_v15 = vpop.f32.mrb[54].mxu1 }
 0x271   :  { %v1524_v14 = vpop.f32.mrb[55].mxu1 }
 0x272   :  { %v2316_v13 = vadd.f32 %v1522_v31, %v2202_v24  ;;  %v1525_v58 = vadd.f32 %v1524_v14, %v1523_v15 }
 0x274   :  { %v2319_v29 = vadd.f32 %v1525_v58, %v2208_v27 }
 0x276   :  { %v1526_v19 = vpop.f32.mrb[56].mxu1 }
 0x277   :  { %v1527_v20 = vpop.f32.mrb[57].mxu1 }
 0x278   :  { %v1528_v21 = vadd.f32 %v1527_v20, %v1526_v19  ;;  %v1529_v23 = vpop.f32.mrb[58].mxu1 }
 0x279   :  { %v1530_v25 = vpop.f32.mrb[59].mxu1 }
 0x27a   :  { %v2324_v35 = vadd.f32 %v1528_v21, %v2216_v30  ;;  %v1531_v16 = vadd.f32 %v1530_v25, %v1529_v23 }
 0x27c   :  { %v2327_v17 = vadd.f32 %v1531_v16, %v2222_v33 }
 0x27e   :  { %v1532_v15 = vpop.f32.mrb[60].mxu1 }
 0x27f   :  { %v1533_v24 = vpop.f32.mrb[61].mxu1 }
 0x280   :  { %v1534_v27 = vadd.f32 %v1533_v24, %v1532_v15  ;;  %v1535_v31 = vpop.f32.mrb[62].mxu1 }
 0x281   :  { %v1536_v58 = vpop.f32.mrb[63].mxu1 }
 0x282   :  { %v2332_v59 = vadd.f32 %v1534_v27, %v2230_v36  ;;  %v1537_v19 = vadd.f32 %v1536_v58, %v1535_v31 }
 0x284   :  { %v2335_v20 = vadd.f32 %v1537_v19, %v2236_v39 }
 0x286   :  { %v1538_v33 = vpop.f32.mrb[64].mxu1 }
 0x287   :  { %v1539_v21 = vpop.f32.mrb[65].mxu1 }
 0x288   :  { %v1540_v23 = vadd.f32 %v1539_v21, %v1538_v33  ;;  %v1541_v25 = vpop.f32.mrb[66].mxu1 }
 0x289   :  { %v1542_v16 = vpop.f32.mrb[67].mxu1 }
 0x28a   :  { %v2340_v14 = vadd.f32 %v1540_v23, %v2244_v56  ;;  %v1543_v15 = vadd.f32 %v1542_v16, %v1541_v25 }
 0x28c   :  { %v2343_v24 = vadd.f32 %v1543_v15, %v2248_v52 }
 0x28e   :  { %v1544_v39 = vpop.f32.mrb[68].mxu1 }
 0x28f   :  { %v1545_v27 = vpop.f32.mrb[69].mxu1 }
 0x290   :  { %v1546_v31 = vadd.f32 %v1545_v27, %v1544_v39  ;;  %v1547_v58 = vpop.f32.mrb[70].mxu1 }
 0x291   :  { %v1548_v19 = vpop.f32.mrb[71].mxu1 }
 0x292   :  { %v2348_v30 = vadd.f32 %v1546_v31, %v2253_v48  ;;  %v1549_v33 = vadd.f32 %v1548_v19, %v1547_v58 }
 0x294   :  { %v2351_v21 = vadd.f32 %v1549_v33, %v2257_v44 }
 0x296   :  { %v1550_v52 = vpop.f32.mrb[72].mxu1 }
 0x297   :  { %v1551_v23 = vpop.f32.mrb[73].mxu1 }
 0x298   :  { %v1552_v25 = vadd.f32 %v1551_v23, %v1550_v52  ;;  %v1553_v16 = vpop.f32.mrb[74].mxu1 }
 0x299   :  { %v1554_v15 = vpop.f32.mrb[75].mxu1 }
 0x29a   :  { %v2356_v36 = vadd.f32 %v1552_v25, %v2261_v40  ;;  %v1555_v39 = vadd.f32 %v1554_v15, %v1553_v16 }
 0x29c   :  { %v2359_v27 = vadd.f32 %v1555_v39, %v2265_v34 }
 0x29e   :  { %v1556_v44 = vpop.f32.mrb[76].mxu1 }
 0x29f   :  { %v1557_v31 = vpop.f32.mrb[77].mxu1 }
 0x2a0   :  { %v1558_v58 = vadd.f32 %v1557_v31, %v1556_v44  ;;  %v1559_v19 = vpop.f32.mrb[78].mxu1 }
 0x2a1   :  { %v1560_v33 = vpop.f32.mrb[79].mxu1 }
 0x2a2   :  { %v2364_v56 = vadd.f32 %v1558_v58, %v2269_v32  ;;  %v1561_v52 = vadd.f32 %v1560_v33, %v1559_v19 }
 0x2a4   :  { %v2367_v23 = vadd.f32 %v1561_v52, %v2273_v50  ;;  %v2593_v52 = vpack.c.bf16 %v2311_v37, %v2308_v41 }
 0x2a6   :  { %v1562_v34 = vpop.f32.mrb[80].mxu1 }
 0x2a7   :  { %v1563_v25 = vpop.f32.mrb[81].mxu1 }
 0x2a8   :  { %v1564_v16 = vadd.f32 %v1563_v25, %v1562_v34  ;;  %v1565_v15 = vpop.f32.mrb[82].mxu1 }
 0x2a9   :  { %v1566_v39 = vpop.f32.mrb[83].mxu1 }
 0x2aa   :  { %v1087_v48 = vadd.f32 %v1564_v16, %v2277_v46  ;;  %v1567_v44 = vadd.f32 %v1566_v39, %v1565_v15 }
 0x2ac   :  { %v1088_v31 = vadd.f32 %v1567_v44, %v2281_v42 }
 0x2ae   :  { %v1568_v12 = vpop.f32.mrb[84].mxu1  ;;  %v1111_v32 = vpack.c.bf16 %v1088_v31, %v1087_v48 }
 0x2af   :  { %v1569_v58 = vpop.f32.mrb[85].mxu1 }
 0x2b0   :  { %v1570_v19 = vadd.f32 %v1569_v58, %v1568_v12  ;;  %v1571_v33 = vpop.f32.mrb[86].mxu1  ;;  %1610 = vmatprep.subr.bf16.mxu0 %v1111_v32  ;;  %v2594_v12 = vpack.c.bf16 %v2319_v29, %v2316_v13 }
 0x2b1   :  { %v1572_v50 = vpop.f32.mrb[87].mxu1  ;;  %1611 = vmatpush3.bf16.msra.mxu0 %v2593_v52 }
 0x2b2   :  { %v1089_v34 = vadd.f32 %v1570_v19, %v2285_v38  ;;  %v1573_v25 = vadd.f32 %v1572_v50, %v1571_v33  ;;  %v2595_v19 = vpack.c.bf16 %v2327_v17, %v2324_v35 }
 0x2b4   :  { %v1090_v40 = vadd.f32 %v1573_v25, %v2289_v54 }
 0x2b6   :  { %v1112_v46 = vpack.c.bf16 %v1090_v40, %v1089_v34  ;;  %v1574_v16 = vpop.f32.mrb[88].mxu1 }
 0x2b7   :  { %v1575_v15 = vpop.f32.mrb[89].mxu1 }
 0x2b8   :  { %v1576_v42 = vadd.f32 %v1575_v15, %v1574_v16  ;;  %v1577_v39 = vpop.f32.mrb[90].mxu1  ;;  %1612 = vmatprep.subr.bf16.mxu0 %v1112_v46  ;;  %v2596_v46 = vpack.c.bf16 %v2335_v20, %v2332_v59 }
 0x2b9   :  { %v1578_v48 = vpop.f32.mrb[91].mxu1  ;;  %1613 = vmatpush3.bf16.msra.mxu0 %v2594_v12  ;;  %v2597_v12 = vpack.c.bf16 %v2343_v24, %v2340_v14 }
 0x2ba   :  { %v1091_v44 = vadd.f32 %v1576_v42, %v2293_v28  ;;  %v1579_v37 = vadd.f32 %v1578_v48, %v1577_v39 }
 0x2bc   :  { %v1092_v41 = vadd.f32 %v1579_v37, %v2297_v26 }
 0x2be   :  { %v1113_v38 = vpack.c.bf16 %v1092_v41, %v1091_v44  ;;  %v1580_v31 = vpop.f32.mrb[92].mxu1 }
 0x2bf   :  { %v1581_v32 = vpop.f32.mrb[93].mxu1 }
 0x2c0   :  { %v1582_v54 = vadd.f32 %v1581_v32, %v1580_v31  ;;  %v1583_v40 = vpop.f32.mrb[94].mxu1  ;;  %1614 = vmatprep.subr.bf16.mxu0 %v1113_v38  ;;  %v2598_v32 = vpack.c.bf16 %v2351_v21, %v2348_v30 }
 0x2c1   :  { %v1584_v58 = vpop.f32.mrb[95].mxu1  ;;  %1615 = vmatpush3.bf16.msra.mxu0 %v2595_v19 }
 0x2c2   :  { %v1093_v33 = vadd.f32 %v1582_v54, %v2301_v22  ;;  %v1585_v13 = vadd.f32 %v1584_v58, %v1583_v40 }
 0x2c4   :  { %v1094_v29 = vadd.f32 %v1585_v13, %v2305_v18  ;;  %v2599_v13 = vpack.c.bf16 %v2359_v27, %v2356_v36 }
 0x2c6   :  { %v1114_v28 = vpack.c.bf16 %v1094_v29, %v1093_v33  ;;  %v1586_v50 = vpop.f32.mrb[96].mxu1 }
 0x2c7   :  { %v1587_v52 = vpop.f32.mrb[97].mxu1 }
 0x2c8   :  { %v1588_v26 = vadd.f32 %v1587_v52, %v1586_v50  ;;  %v1589_v34 = vpop.f32.mrb[98].mxu1  ;;  %1616 = vmatprep.subr.bf16.mxu0 %v1114_v28 }
 0x2c9   :  { %v1590_v25 = vpop.f32.mrb[99].mxu1  ;;  %1617 = vmatpush3.bf16.msra.mxu0 %v2596_v46 }
 0x2ca   :  { %v1095_v16 = vadd.f32 %v1588_v26, %v2088_v43  ;;  %v1591_v35 = vadd.f32 %v1590_v25, %v1589_v34  ;;  %v2617_v26 = vld [vmem:[#allocation27_spill] sm:$0xff] }
 0x2cc   :  { %v1096_v17 = vadd.f32 %v1591_v35, %v2092_v45 }
 0x2ce   :  { %v1592_v22 = vpop.f32.mrb[100].mxu1  ;;  %v1115_v15 = vpack.c.bf16 %v1096_v17, %v1095_v16 }
 0x2cf   :  { %v1593_v42 = vpop.f32.mrb[101].mxu1 }
 0x2d0   :  { %v1594_v18 = vadd.f32 %v1593_v42, %v1592_v22  ;;  %v1595_v39 = vpop.f32.mrb[102].mxu1  ;;  %1618 = vmatprep.subr.bf16.mxu0 %v1115_v15  ;;  %v2618_v15 = vld [vmem:[#allocation30_spill] sm:$0xff] }
 0x2d1   :  { %v1596_v48 = vpop.f32.mrb[103].mxu1  ;;  %1619 = vmatpush3.bf16.msra.mxu0 %v2597_v12 }
 0x2d2   :  { %v1097_v44 = vadd.f32 %v1594_v18, %v2096_v47  ;;  %v1597_v59 = vadd.f32 %v1596_v48, %v1595_v39  ;;  %v2619_v48 = vld [vmem:[#allocation33_spill] sm:$0xff] }
 0x2d4   :  { %v1098_v20 = vadd.f32 %v1597_v59, %v2100_v49 }
 0x2d6   :  { %v1598_v43 = vpop.f32.mrb[104].mxu1  ;;  %v1116_v37 = vpack.c.bf16 %v1098_v20, %v1097_v44 }
 0x2d7   :  { %v1599_v41 = vpop.f32.mrb[105].mxu1 }
 0x2d8   :  { %v1600_v45 = vadd.f32 %v1599_v41, %v1598_v43  ;;  %v1601_v38 = vpop.f32.mrb[106].mxu1  ;;  %1620 = vmatprep.subr.bf16.mxu0 %v1116_v37 }
 0x2d9   :  { %v1602_v31 = vpop.f32.mrb[107].mxu1  ;;  %1621 = vmatpush3.bf16.msra.mxu0 %v2598_v32 }
 0x2da   :  { %v1099_v54 = vadd.f32 %v1600_v45, %v2104_v51  ;;  %v1603_v14 = vadd.f32 %v1602_v31, %v1601_v38  ;;  %v2620_v45 = vld [vmem:[#allocation34_spill] sm:$0xff] }
 0x2dc   :  { %v1100_v24 = vadd.f32 %v1603_v14, %v2108_v53  ;;  %v2600_v53 = vpack.c.bf16 %v2367_v23, %v2364_v56  ;;  %v2445_v56 = vld [vmem:[%s2529_s3] ss:$0 sm:$0xff]  ;;  %s1997_s3 = smov [#allocation8]  }
 0x2dd   :  { %v2616_v23 = vld [vmem:[#allocation20_spill] sm:$0xff]  ;;  %s1388_s30 = sshll.u32 %s1997_s3, 4  ;;  %s1389_s30 = int_to_ptr.vmem [resolvable:$true] %s1388_s30 }
 0x2de   :  { %v1604_v47 = vpop.f32.mrb[108].mxu1  ;;  %v1117_v40 = vpack.c.bf16 %v1100_v24, %v1099_v54  ;;  %v2621_v54 = vld [vmem:[#allocation37_spill] sm:$0xff]  ;;  %s1959_s5 = scalar_lea.vmem %s1389_s30, 4096  ;;  %p1964_p11 = scmp.lt.s32.totalorder %s1389_s30, %s1389_s30 }
 0x2df   :  { %v1605_v58 = vpop.f32.mrb[109].mxu1  ;;  %p1960_p10 = scmp.ne.s32.totalorder %s1389_s30, %s1959_s5  ;;  %p1965_p12 = scmp.lt.s32.totalorder %s1959_s5, %s1959_s5 }
 0x2e0   :  { %v1606_v49 = vadd.f32 %v1605_v58, %v1604_v47  ;;  %v1607_v19 = vpop.f32.mrb[110].mxu1  ;;  %1622 = vmatprep.subr.bf16.mxu0 %v1117_v40 }
 0x2e1   :  { %v1608_v33 = vpop.f32.mrb[111].mxu1  ;;  %1623 = vmatpush3.bf16.msra.mxu0 %v2599_v13  ;;  %p1966_p13 = por %p1965_p12, %p1964_p11 }
 0x2e2   :  { %v1101_v29 = vadd.f32 %v1606_v49, %v2112_v55  ;;  %v1609_v30 = vadd.f32 %v1608_v33, %v1607_v19  ;;  %v2601_v55 = vld [vmem:[#allocation21_spill] sm:$0xff]  ;;  %v2622_v33 = vld [vmem:[#allocation38_spill] sm:$0xff] }
 0x2e3   :  { %p1967_p0 = pnand %p1966_p13, %p1960_p10 }
 0x2e4   :  { %v1102_v21 = vadd.f32 %v1609_v30, %v2116_v57  ;;  %v2602_v57 = vld [vmem:[#allocation22_spill] sm:$0xff] }
 0x2e6   :  { %v1118_v51 = vpack.c.bf16 %v1102_v21, %v1101_v29  ;;  %v2623_v21 = vld [vmem:[#allocation41_spill] sm:$0xff] }
 0x2e8   :  { %1624 = vmatprep.subr.bf16.mxu0 %v1118_v51 }
 0x2e9   :  { %1625 = vmatpush3.bf16.msra.mxu0 %v2600_v53 }
 0x2ec   :  { %1152 = vmatmul.mubr.bf16.vlgmr.msra.gmra.mrb[48].mxu0 %v2122_v60  ;;  %v2603_v60 = vld [vmem:[#allocation23_spill] sm:$0xff] }
 0x2ed   :  { %1159 = vmatprep.mubr.bf16.mxu0 %v2124_v61  ;;  %v2604_v61 = vld [vmem:[#allocation24_spill] sm:$0xff] }
 0x2f4   :  { %1160 = vmatmul.mubr.bf16.gmra.mrb[52].mxu0 %v2128_v62  ;;  %v2605_v62 = vld [vmem:[#allocation25_spill] sm:$0xff] }
 0x2f5   :  { %1167 = vmatprep.mubr.bf16.mxu0 %v2130_v63  ;;  %v2606_v63 = vld [vmem:[#allocation26_spill] sm:$0xff] }
 0x2fc   :  { %1168 = vmatmul.mubr.bf16.gmra.mrb[56].mxu0 %v2134_v0  ;;  %v2607_v0 = vld [vmem:[#allocation28_spill] sm:$0xff] }
 0x2fd   :  { %1175 = vmatprep.mubr.bf16.mxu0 %v2136_v1  ;;  %v2608_v1 = vld [vmem:[#allocation29_spill] sm:$0xff] }
 0x304   :  { %1176 = vmatmul.mubr.bf16.gmra.mrb[60].mxu0 %v2140_v2  ;;  %v2609_v2 = vld [vmem:[#allocation31_spill] sm:$0xff] }
 0x305   :  { %1183 = vmatprep.mubr.bf16.mxu0 %v2142_v3  ;;  %v2610_v3 = vld [vmem:[#allocation32_spill] sm:$0xff] }
 0x30c   :  { %1184 = vmatmul.mubr.bf16.gmra.mrb[64].mxu0 %v2146_v4  ;;  %v2611_v4 = vld [vmem:[#allocation35_spill] sm:$0xff] }
 0x30d   :  { %1191 = vmatprep.mubr.bf16.mxu0 %v2148_v5  ;;  %v2612_v5 = vld [vmem:[#allocation36_spill] sm:$0xff] }
 0x314   :  { %1192 = vmatmul.mubr.bf16.gmra.mrb[68].mxu0 %v2152_v6  ;;  %v2613_v6 = vld [vmem:[#allocation39_spill] sm:$0xff] }
 0x315   :  { %1199 = vmatprep.mubr.bf16.mxu0 %v2154_v7  ;;  %v2614_v7 = vld [vmem:[#allocation40_spill] sm:$0xff] }
 0x31c   :  { %1200 = vmatmul.mubr.bf16.gmra.mrb[72].mxu0 %v2158_v8  ;;  %v2615_v8 = vld [vmem:[#allocation43_spill] sm:$0xff] }
 0x31d   :  { %1207 = vmatprep.mubr.bf16.mxu0 %v2160_v9 }
 0x324   :  { %1208 = vmatmul.mubr.bf16.gmra.mrb[76].mxu0 %v2164_v10 }
 0x325   :  { %1215 = vmatprep.mubr.bf16.mxu0 %v2166_v11 }
 0x32c   :  { %1216 = vmatmul.mubr.bf16.gmra.mrb[80].mxu0 %v2601_v55 }
 0x32d   :  { %1223 = vmatprep.mubr.bf16.mxu0 %v2602_v57 }
 0x334   :  { %1224 = vmatmul.mubr.bf16.gmra.mrb[84].mxu0 %v2603_v60 }
 0x335   :  { %1231 = vmatprep.mubr.bf16.mxu0 %v2604_v61 }
 0x33c   :  { %1232 = vmatmul.mubr.bf16.gmra.mrb[88].mxu0 %v2605_v62 }
 0x33d   :  { %1239 = vmatprep.mubr.bf16.mxu0 %v2606_v63  ;;  %v2624_v63 = vld [vmem:[#allocation42_spill] sm:$0xff] }
 0x344   :  { %1240 = vmatmul.mubr.bf16.gmra.mrb[92].mxu0 %v2607_v0 }
 0x345   :  { %1247 = vmatprep.mubr.bf16.mxu0 %v2608_v1 }
 0x34c   :  { %1248 = vmatmul.mubr.bf16.gmra.mrb[96].mxu0 %v2609_v2 }
 0x34d   :  { %1255 = vmatprep.mubr.bf16.mxu0 %v2610_v3  ;;  %v2625_v3 = vld [vmem:[#allocation44_spill] sm:$0xff] }
 0x354   :  { %1256 = vmatmul.mubr.bf16.gmra.mrb[100].mxu0 %v2611_v4 }
 0x355   :  { %1263 = vmatprep.mubr.bf16.mxu0 %v2612_v5 }
 0x35c   :  { %1264 = vmatmul.mubr.bf16.gmra.mrb[104].mxu0 %v2613_v6 }
 0x35d   :  { %1271 = vmatprep.mubr.bf16.mxu0 %v2614_v7 }
 0x364   :  { %1272 = vmatmul.mubr.bf16.gmra.mrb[108].mxu0 %v2615_v8 }
 0x3bf   :  { %v1626_v9 = vpop.f32.mrb[48].mxu0 }
 0x3c0   :  { %v1627_v10 = vpop.f32.mrb[49].mxu0 }
 0x3c1   :  { %v1628_v11 = vadd.f32 %v1627_v10, %v1626_v9  ;;  %v1629_v36 = vpop.f32.mrb[50].mxu0 }
 0x3c2   :  { %v1630_v27 = vpop.f32.mrb[51].mxu0 }
 0x3c3   :  { %v1280_v28 = vadd.f32 %v1628_v11, %v2616_v23  ;;  %v1631_v50 = vadd.f32 %v1630_v27, %v1629_v36  ;;  %v2626_v11 = vld [vmem:[#allocation45_spill] sm:$0xff] }
 0x3c5   :  { %v1319_v52 = vadd.f32 %v2445_v56, %v1280_v28  ;;  %v1281_v34 = vadd.f32 %v1631_v50, %v2617_v26  ;;  %v2627_v28 = vld [vmem:[#allocation46_spill] sm:$0xff] }
 0x3c7   :  { %1351 = vst [vmem:[#allocation8] sm:$0xff] %v1319_v52  ;;  %v1320_v25 = vadd.f32 %v2445_v56, %v1281_v34  ;;  %v1632_v46 = vpop.f32.mrb[52].mxu0 }
 0x3c8   :  { %v1633_v16 = vpop.f32.mrb[53].mxu0 }
 0x3c9   :  { %1352 = vst [vmem:[#allocation8 + $0x8] sm:$0xff] %v1320_v25  ;;  %v1634_v35 = vadd.f32 %v1633_v16, %v1632_v46  ;;  %v1635_v17 = vpop.f32.mrb[54].mxu0 }
 0x3ca   :  { %v1636_v22 = vpop.f32.mrb[55].mxu0 }
 0x3cb   :  { %v1282_v42 = vadd.f32 %v1634_v35, %v2618_v15  ;;  %v1637_v18 = vadd.f32 %v1636_v22, %v1635_v17  ;;  %v2628_v35 = vld [vmem:[#allocation47_spill] sm:$0xff] }
 0x3cd   :  { %v1321_v39 = vadd.f32 %v2445_v56, %v1282_v42  ;;  %v1283_v12 = vadd.f32 %v1637_v18, %v2619_v48  ;;  %v2629_v42 = vld [vmem:[#allocation48_spill] sm:$0xff] }
 0x3cf   :  { %1353 = vst [vmem:[#allocation8 + $0x10] sm:$0xff] %v1321_v39  ;;  %v1322_v44 = vadd.f32 %v2445_v56, %v1283_v12  ;;  %v1638_v59 = vpop.f32.mrb[56].mxu0 }
 0x3d0   :  { %v1639_v20 = vpop.f32.mrb[57].mxu0 }
 0x3d1   :  { %1354 = vst [vmem:[#allocation8 + $0x18] sm:$0xff] %v1322_v44  ;;  %v1640_v43 = vadd.f32 %v1639_v20, %v1638_v59  ;;  %v1641_v37 = vpop.f32.mrb[58].mxu0 }
 0x3d2   :  { %v1642_v41 = vpop.f32.mrb[59].mxu0 }
 0x3d3   :  { %v1284_v38 = vadd.f32 %v1640_v43, %v2620_v45  ;;  %v1643_v31 = vadd.f32 %v1642_v41, %v1641_v37  ;;  %v2630_v43 = vld [vmem:[#allocation49_spill] sm:$0xff] }
 0x3d5   :  { %v1323_v32 = vadd.f32 %v2445_v56, %v1284_v38  ;;  %v1285_v14 = vadd.f32 %v1643_v31, %v2621_v54  ;;  %v2631_v38 = vld [vmem:[#allocation50_spill] sm:$0xff] }
 0x3d7   :  { %1355 = vst [vmem:[#allocation8 + $0x20] sm:$0xff] %v1323_v32  ;;  %v1324_v24 = vadd.f32 %v2445_v56, %v1285_v14  ;;  %v1644_v47 = vpop.f32.mrb[60].mxu0 }
 0x3d8   :  { %v1645_v40 = vpop.f32.mrb[61].mxu0 }
 0x3d9   :  { %1356 = vst [vmem:[#allocation8 + $0x28] sm:$0xff] %v1324_v24  ;;  %v1646_v58 = vadd.f32 %v1645_v40, %v1644_v47  ;;  %v1647_v49 = vpop.f32.mrb[62].mxu0 }
 0x3da   :  { %v1648_v19 = vpop.f32.mrb[63].mxu0 }
 0x3db   :  { %v1286_v13 = vadd.f32 %v1646_v58, %v2622_v33  ;;  %v1649_v29 = vadd.f32 %v1648_v19, %v1647_v49  ;;  %v2632_v58 = vld [vmem:[#allocation51_spill] sm:$0xff] }
 0x3dd   :  { %v1325_v30 = vadd.f32 %v2445_v56, %v1286_v13  ;;  %v1287_v51 = vadd.f32 %v1649_v29, %v2623_v21  ;;  %v2633_v13 = vld [vmem:[#allocation52_spill] sm:$0xff] }
 0x3df   :  { %1357 = vst [vmem:[#allocation8 + $0x30] sm:$0xff] %v1325_v30  ;;  %v1326_v53 = vadd.f32 %v2445_v56, %v1287_v51  ;;  %v1650_v55 = vpop.f32.mrb[64].mxu0 }
 0x3e0   :  { %v1651_v57 = vpop.f32.mrb[65].mxu0 }
 0x3e1   :  { %1358 = vst [vmem:[#allocation8 + $0x38] sm:$0xff] %v1326_v53  ;;  %v1652_v60 = vadd.f32 %v1651_v57, %v1650_v55  ;;  %v1653_v61 = vpop.f32.mrb[66].mxu0 }
 0x3e2   :  { %v1654_v62 = vpop.f32.mrb[67].mxu0 }
 0x3e3   :  { %v1288_v0 = vadd.f32 %v1652_v60, %v2624_v63  ;;  %v1655_v1 = vadd.f32 %v1654_v62, %v1653_v61  ;;  %v2634_v60 = vld [vmem:[#allocation53_spill] sm:$0xff] }
 0x3e5   :  { %v1327_v2 = vadd.f32 %v2445_v56, %v1288_v0  ;;  %v1289_v4 = vadd.f32 %v1655_v1, %v2625_v3  ;;  %v2635_v0 = vld [vmem:[#allocation54_spill] sm:$0xff] }
 0x3e7   :  { %1359 = vst [vmem:[#allocation8 + $0x40] sm:$0xff] %v1327_v2  ;;  %v1328_v5 = vadd.f32 %v2445_v56, %v1289_v4  ;;  %v1656_v6 = vpop.f32.mrb[68].mxu0 }
 0x3e8   :  { %v1657_v7 = vpop.f32.mrb[69].mxu0 }
 0x3e9   :  { %1360 = vst [vmem:[#allocation8 + $0x48] sm:$0xff] %v1328_v5  ;;  %v1658_v8 = vadd.f32 %v1657_v7, %v1656_v6  ;;  %v1659_v9 = vpop.f32.mrb[70].mxu0 }
 0x3ea   :  { %v1660_v10 = vpop.f32.mrb[71].mxu0 }
 0x3eb   :  { %v1290_v36 = vadd.f32 %v1658_v8, %v2626_v11  ;;  %v1661_v27 = vadd.f32 %v1660_v10, %v1659_v9  ;;  %v2636_v8 = vld [vmem:[#allocation55_spill] sm:$0xff] }
 0x3ed   :  { %v1329_v23 = vadd.f32 %v2445_v56, %v1290_v36  ;;  %v1291_v50 = vadd.f32 %v1661_v27, %v2627_v28  ;;  %v2637_v36 = vld [vmem:[#allocation56_spill] sm:$0xff] }
 0x3ef   :  { %1361 = vst [vmem:[#allocation8 + $0x50] sm:$0xff] %v1329_v23  ;;  %v1330_v52 = vadd.f32 %v2445_v56, %v1291_v50  ;;  %v1662_v26 = vpop.f32.mrb[72].mxu0 }
 0x3f0   :  { %v1663_v34 = vpop.f32.mrb[73].mxu0 }
 0x3f1   :  { %1362 = vst [vmem:[#allocation8 + $0x58] sm:$0xff] %v1330_v52  ;;  %v1664_v25 = vadd.f32 %v1663_v34, %v1662_v26  ;;  %v1665_v46 = vpop.f32.mrb[74].mxu0 }
 0x3f2   :  { %v1666_v16 = vpop.f32.mrb[75].mxu0 }
 0x3f3   :  { %v1292_v17 = vadd.f32 %v1664_v25, %v2628_v35  ;;  %v1667_v22 = vadd.f32 %v1666_v16, %v1665_v46  ;;  %v2638_v25 = vld [vmem:[#allocation57_spill] sm:$0xff] }
 0x3f5   :  { %v1331_v15 = vadd.f32 %v2445_v56, %v1292_v17  ;;  %v1293_v18 = vadd.f32 %v1667_v22, %v2629_v42  ;;  %v2639_v17 = vld [vmem:[#allocation58_spill] sm:$0xff] }
 0x3f7   :  { %1363 = vst [vmem:[#allocation8 + $0x60] sm:$0xff] %v1331_v15  ;;  %v1332_v39 = vadd.f32 %v2445_v56, %v1293_v18  ;;  %v1668_v48 = vpop.f32.mrb[76].mxu0 }
 0x3f8   :  { %v1669_v12 = vpop.f32.mrb[77].mxu0 }
 0x3f9   :  { %1364 = vst [vmem:[#allocation8 + $0x68] sm:$0xff] %v1332_v39  ;;  %v1670_v44 = vadd.f32 %v1669_v12, %v1668_v48  ;;  %v1671_v59 = vpop.f32.mrb[78].mxu0 }
 0x3fa   :  { %v1672_v20 = vpop.f32.mrb[79].mxu0 }
 0x3fb   :  { %v1294_v37 = vadd.f32 %v1670_v44, %v2630_v43  ;;  %v1673_v41 = vadd.f32 %v1672_v20, %v1671_v59  ;;  %v2640_v44 = vld [vmem:[#allocation12_spill] sm:$0xff] }
 0x3fd   :  { %v1333_v45 = vadd.f32 %v2445_v56, %v1294_v37  ;;  %v1295_v31 = vadd.f32 %v1673_v41, %v2631_v38  ;;  %v2641_v37 = vld [vmem:[#allocation13_spill] sm:$0xff] }
 0x3ff   :  { %1365 = vst [vmem:[#allocation8 + $0x70] sm:$0xff] %v1333_v45  ;;  %v1334_v32 = vadd.f32 %v2445_v56, %v1295_v31  ;;  %v1674_v54 = vpop.f32.mrb[80].mxu0 }
 0x400   :  { %v1675_v14 = vpop.f32.mrb[81].mxu0 }
 0x401   :  { %1366 = vst [vmem:[#allocation8 + $0x78] sm:$0xff] %v1334_v32  ;;  %v1676_v24 = vadd.f32 %v1675_v14, %v1674_v54  ;;  %v1677_v47 = vpop.f32.mrb[82].mxu0 }
 0x402   :  { %v1678_v40 = vpop.f32.mrb[83].mxu0 }
 0x403   :  { %v1296_v49 = vadd.f32 %v1676_v24, %v2632_v58  ;;  %v1679_v19 = vadd.f32 %v1678_v40, %v1677_v47  ;;  %v2642_v24 = vld [vmem:[#allocation14_spill] sm:$0xff] }
 0x405   :  { %v1335_v33 = vadd.f32 %v2445_v56, %v1296_v49  ;;  %v1297_v29 = vadd.f32 %v1679_v19, %v2633_v13  ;;  %v2643_v49 = vld [vmem:[#allocation15_spill] sm:$0xff] }
 0x407   :  { %1367 = vst [vmem:[#allocation8 + $0x80] sm:$0xff] %v1335_v33  ;;  %v1336_v30 = vadd.f32 %v2445_v56, %v1297_v29  ;;  %v1680_v21 = vpop.f32.mrb[84].mxu0 }
 0x408   :  { %v1681_v51 = vpop.f32.mrb[85].mxu0 }
 0x409   :  { %1368 = vst [vmem:[#allocation8 + $0x88] sm:$0xff] %v1336_v30  ;;  %v1682_v53 = vadd.f32 %v1681_v51, %v1680_v21  ;;  %v1683_v55 = vpop.f32.mrb[86].mxu0 }
 0x40a   :  { %v1684_v57 = vpop.f32.mrb[87].mxu0 }
 0x40b   :  { %v1298_v61 = vadd.f32 %v1682_v53, %v2634_v60  ;;  %v1685_v62 = vadd.f32 %v1684_v57, %v1683_v55  ;;  %v2644_v53 = vld [vmem:[#allocation16_spill] sm:$0xff] }
 0x40d   :  { %v1337_v63 = vadd.f32 %v2445_v56, %v1298_v61  ;;  %v1299_v1 = vadd.f32 %v1685_v62, %v2635_v0  ;;  %v2645_v61 = vld [vmem:[#allocation17_spill] sm:$0xff] }
 0x40f   :  { %1369 = vst [vmem:[#allocation8 + $0x90] sm:$0xff] %v1337_v63  ;;  %v1338_v2 = vadd.f32 %v2445_v56, %v1299_v1  ;;  %v1686_v3 = vpop.f32.mrb[88].mxu0 }
 0x410   :  { %v1687_v4 = vpop.f32.mrb[89].mxu0 }
 0x411   :  { %1370 = vst [vmem:[#allocation8 + $0x98] sm:$0xff] %v1338_v2  ;;  %v1688_v5 = vadd.f32 %v1687_v4, %v1686_v3  ;;  %v1689_v6 = vpop.f32.mrb[90].mxu0 }
 0x412   :  { %v1690_v7 = vpop.f32.mrb[91].mxu0 }
 0x413   :  { %v1300_v9 = vadd.f32 %v1688_v5, %v2636_v8  ;;  %v1691_v10 = vadd.f32 %v1690_v7, %v1689_v6  ;;  %v2646_v5 = vld [vmem:[#allocation18_spill] sm:$0xff] }
 0x415   :  { %v1339_v11 = vadd.f32 %v2445_v56, %v1300_v9  ;;  %v1301_v27 = vadd.f32 %v1691_v10, %v2637_v36  ;;  %v2647_v9 = vld [vmem:[#allocation19_spill] sm:$0xff] }
 0x417   :  { %1371 = vst [vmem:[#allocation8 + $0xa0] sm:$0xff] %v1339_v11  ;;  %v1340_v23 = vadd.f32 %v2445_v56, %v1301_v27  ;;  %v1692_v28 = vpop.f32.mrb[92].mxu0 }
 0x418   :  { %v1693_v50 = vpop.f32.mrb[93].mxu0 }
 0x419   :  { %1372 = vst [vmem:[#allocation8 + $0xa8] sm:$0xff] %v1340_v23  ;;  %v1694_v52 = vadd.f32 %v1693_v50, %v1692_v28  ;;  %v1695_v26 = vpop.f32.mrb[94].mxu0 }
 0x41a   :  { %v1696_v34 = vpop.f32.mrb[95].mxu0 }
 0x41b   :  { %v1302_v46 = vadd.f32 %v1694_v52, %v2638_v25  ;;  %v1697_v16 = vadd.f32 %v1696_v34, %v1695_v26 }
 0x41d   :  { %v1341_v35 = vadd.f32 %v2445_v56, %v1302_v46  ;;  %v1303_v22 = vadd.f32 %v1697_v16, %v2639_v17 }
 0x41f   :  { %1373 = vst [vmem:[#allocation8 + $0xb0] sm:$0xff] %v1341_v35  ;;  %v1342_v15 = vadd.f32 %v2445_v56, %v1303_v22  ;;  %v1698_v42 = vpop.f32.mrb[96].mxu0 }
 0x420   :  { %v1699_v18 = vpop.f32.mrb[97].mxu0 }
 0x421   :  { %1374 = vst [vmem:[#allocation8 + $0xb8] sm:$0xff] %v1342_v15  ;;  %v1700_v39 = vadd.f32 %v1699_v18, %v1698_v42  ;;  %v1701_v48 = vpop.f32.mrb[98].mxu0 }
 0x422   :  { %v1702_v12 = vpop.f32.mrb[99].mxu0 }
 0x423   :  { %v1304_v59 = vadd.f32 %v1700_v39, %v2640_v44  ;;  %v1703_v20 = vadd.f32 %v1702_v12, %v1701_v48 }
 0x425   :  { %v1343_v43 = vadd.f32 %v2445_v56, %v1304_v59  ;;  %v1305_v41 = vadd.f32 %v1703_v20, %v2641_v37 }
 0x427   :  { %1375 = vst [vmem:[#allocation8 + $0xc0] sm:$0xff] %v1343_v43  ;;  %v1344_v45 = vadd.f32 %v2445_v56, %v1305_v41  ;;  %v1704_v38 = vpop.f32.mrb[100].mxu0 }
 0x428   :  { %v1705_v31 = vpop.f32.mrb[101].mxu0 }
 0x429   :  { %1376 = vst [vmem:[#allocation8 + $0xc8] sm:$0xff] %v1344_v45  ;;  %v1706_v32 = vadd.f32 %v1705_v31, %v1704_v38  ;;  %v1707_v54 = vpop.f32.mrb[102].mxu0 }
 0x42a   :  { %v1708_v14 = vpop.f32.mrb[103].mxu0 }
 0x42b   :  { %v1306_v47 = vadd.f32 %v1706_v32, %v2642_v24  ;;  %v1709_v40 = vadd.f32 %v1708_v14, %v1707_v54 }
 0x42d   :  { %v1345_v58 = vadd.f32 %v2445_v56, %v1306_v47  ;;  %v1307_v19 = vadd.f32 %v1709_v40, %v2643_v49 }
 0x42f   :  { %1377 = vst [vmem:[#allocation8 + $0xd0] sm:$0xff] %v1345_v58  ;;  %v1346_v33 = vadd.f32 %v2445_v56, %v1307_v19  ;;  %v1710_v13 = vpop.f32.mrb[104].mxu0 }
 0x430   :  { %v1711_v29 = vpop.f32.mrb[105].mxu0 }
 0x431   :  { %1378 = vst [vmem:[#allocation8 + $0xd8] sm:$0xff] %v1346_v33  ;;  %v1712_v30 = vadd.f32 %v1711_v29, %v1710_v13  ;;  %v1713_v21 = vpop.f32.mrb[106].mxu0 }
 0x432   :  { %v1714_v51 = vpop.f32.mrb[107].mxu0 }
 0x433   :  { %v1308_v55 = vadd.f32 %v1712_v30, %v2644_v53  ;;  %v1715_v57 = vadd.f32 %v1714_v51, %v1713_v21 }
 0x435   :  { %v1347_v60 = vadd.f32 %v2445_v56, %v1308_v55  ;;  %v1309_v62 = vadd.f32 %v1715_v57, %v2645_v61 }
 0x437   :  { %1379 = vst [vmem:[#allocation8 + $0xe0] sm:$0xff] %v1347_v60  ;;  %v1348_v63 = vadd.f32 %v2445_v56, %v1309_v62  ;;  %v1716_v0 = vpop.f32.mrb[108].mxu0 }
 0x438   :  { %v1717_v1 = vpop.f32.mrb[109].mxu0 }
 0x439   :  { %1380 = vst [vmem:[#allocation8 + $0xe8] sm:$0xff] %v1348_v63  ;;  %v1718_v2 = vadd.f32 %v1717_v1, %v1716_v0  ;;  %v1719_v3 = vpop.f32.mrb[110].mxu0 }
 0x43a   :  { %v1720_v4 = vpop.f32.mrb[111].mxu0 }
 0x43b   :  { %v1310_v6 = vadd.f32 %v1718_v2, %v2646_v5  ;;  %v1721_v7 = vadd.f32 %v1720_v4, %v1719_v3 }
 0x43d   :  { %v1349_v8 = vadd.f32 %v2445_v56, %v1310_v6  ;;  %v1311_v10 = vadd.f32 %v1721_v7, %v2647_v9 }
 0x43f   :  { %1381 = vst [vmem:[#allocation8 + $0xf0] sm:$0xff] %v1349_v8  ;;  %v1350_v11 = vadd.f32 %v2445_v56, %v1311_v10 }
 0x441   :  { %1382 = vst [vmem:[#allocation8 + $0xf8] sm:$0xff] %v1350_v11 }
 0x442   :  { %1970 = shalt.err (!%p1967_p0)
}
 0x443   :  { %s1971_s8 = scalar_lea.hbm %s2530_s4, 4096 }
 0x444   :  { %p1972_p1 = scmp.ne.s32.totalorder %s2530_s4, %s1971_s8  ;;  %p1975_p2 = scmp.lt.u32.totalorder %s1971_s8, %s2530_s4 }
 0x446   :  { %p1977_p3 = pnand %p1975_p2, %p1972_p1 }
 0x448   :  { %1980 = shalt.err (!%p1977_p3)
}
 0x449   :  { %1394 = dma.vmem_to_hbm [thread:$0]  %s1389_s30, 4096, %s2530_s4, [#allocation4], %s1994_s0, %s1994_s0, %s1995_s26  }
 0x44a   :  { %1985 = dma.done.wait [#allocation4], 4096  }
 0x44b   :  { %1986 = vsyncadd [#allocation4], 4294963200 }
 0x44c   :  { %1398 = vsyncpa [#allocation3], 1 }
 0x44d   :  { %1399 = vsyncpa [#allocation6], 1 }
 0x44e   :  { %1400 = vsyncpa [#allocation4], 1 }

</bundles_post_ra>
